<compile_context>
chip_gen: v5e
topology: v5e:2x2
jax: 0.10.0
libtpu: 0.0.40
codegen_flags: <defaults>
</compile_context>

<pallas_src>
import math

import jax
import jax.numpy as jnp
from jax.experimental import pallas as pl
from jax.experimental.pallas import tpu as pltpu

STATE_SIZE = 8
FC1_UNIT = 4000          # module default
FC2_UNIT = 8             # module default
ACTION_SIZE = 4          # fc4 output size (hard-coded 4 in the module)

_LANE = 128
_SUB = 8
FC1_PAD = ((FC1_UNIT + _LANE - 1) // _LANE) * _LANE   # 4096 (lane-aligned hidden dim)
FC2_PAD = _LANE                                       # 128  (lane-dense fc2 output)
ACTION_PAD = _LANE                                    # 128  (lane-dense action slab)

HID_CHUNK = 512                                       # fused fc1->fc2 chunk width
N_CHUNKS = FC1_PAD // HID_CHUNK                       # 8

TB_MAX = 512                                          # rows per grid step (v7x-safe)


def _round_up(x, m):
    return -(-x // m) * m


def qnetwork_kernel(x_ref, w1_ref, b1_ref, w2_ref, b2_ref, w3_ref, b3_ref, out_ref):
    # state_batch = state_batch.float(); cast to bf16 only for the MXU feed,
    # accumulation / bias-add / ReLU stay f32 (v5e-safe).
    x = x_ref[...].astype(jnp.bfloat16)                 # (TB, 8)
    tb = x_ref.shape[0]

    # Fused: x_state = relu(fc2(relu(fc1(state_batch)))) without materializing
    # the full (TB, 4096) hidden activation. Static slices -> zero-cost views,
    # fully unrolled so the LLO scheduler sees the whole chunk pipeline.
    acc2 = jnp.zeros((tb, FC2_PAD), jnp.float32)
    for c in range(N_CHUNKS):
        lo = c * HID_CHUNK
        hi = lo + HID_CHUNK
        h1c = jnp.dot(x, w1_ref[:, lo:hi],
                      preferred_element_type=jnp.float32) + b1_ref[:, lo:hi]
        h1c = jnp.maximum(h1c, 0.0).astype(jnp.bfloat16)        # (TB, 512) bf16
        acc2 = acc2 + jnp.dot(h1c, w2_ref[lo:hi, :],
                              preferred_element_type=jnp.float32)
    h2 = jnp.maximum(acc2 + b2_ref[...], 0.0)            # (TB, 128) f32, cols >=8 are 0

    # actions = fc4(x_state)                              (TB, 128) f32, cols >=4 are 0
    out_ref[...] = (
        jnp.dot(h2, w3_ref[...], preferred_element_type=jnp.float32) + b3_ref[...]
    )


def prepare_params(w1_pt, b1_pt, w2_pt, b2_pt, w3_pt, b3_pt):
    """PyTorch-layout (out_features, in_features) f32 params -> kernel layout.

    Call once and cache; do not re-run per forward.
    """
    # fc1: (4000, 8) -> (8, 4096) bf16, zero-padded hidden columns.
    w1 = jnp.zeros((STATE_SIZE, FC1_PAD), jnp.float32)
    w1 = w1.at[:, :FC1_UNIT].set(w1_pt.T).astype(jnp.bfloat16)
    b1 = jnp.zeros((1, FC1_PAD), jnp.float32).at[:, :FC1_UNIT].set(b1_pt)
    # fc2: PyTorch (8, 4000) -> canonical (K, N) = (4096, 128) bf16, zero-padded.
    w2 = jnp.zeros((FC1_PAD, FC2_PAD), jnp.float32)
    w2 = w2.at[:FC1_UNIT, :FC2_UNIT].set(w2_pt.T).astype(jnp.bfloat16)
    b2 = jnp.zeros((1, FC2_PAD), jnp.float32).at[:, :FC2_UNIT].set(b2_pt)
    # fc4: PyTorch (4, 8) -> (128, 128) f32, zero-padded (lane-dense output path).
    w3 = jnp.zeros((FC2_PAD, ACTION_PAD), jnp.float32)
    w3 = w3.at[:FC2_UNIT, :ACTION_SIZE].set(w3_pt.T)
    b3 = jnp.zeros((1, ACTION_PAD), jnp.float32).at[:, :ACTION_SIZE].set(b3_pt)
    return w1, b1, w2, b2, w3, b3


def qnetwork_forward(x, params, tb_max=TB_MAX):
    w1, b1, w2, b2, w3, b3 = params
    B = x.shape[0]
    x = x.astype(jnp.float32)

    # Pad batch to a multiple of 8 sublanes; up to tb_max rows per grid step so
    # the ~0.35 us per-step grid overhead is amortized over a large tile.
    TB = min(tb_max, _round_up(B, _SUB))
    B_pad = _round_up(B, TB)
    if B_pad != B:
        x = jnp.pad(x, ((0, B_pad - B), (0, 0)))

    const = lambda i: (0, 0)   # weights: same block every step -> stay VMEM-resident

    flops = 2 * B_pad * (STATE_SIZE * FC1_PAD + FC1_PAD * FC2_PAD + FC2_PAD * ACTION_PAD)
    bytes_accessed = (
        w1.size * 2 + b1.size * 4 + w2.size * 2 + b2.size * 4 + w3.size * 4 + b3.size * 4
        + B_pad * STATE_SIZE * 4 + B_pad * ACTION_PAD * 4
    )

    out = pl.pallas_call(
        qnetwork_kernel,
        out_shape=jax.ShapeDtypeStruct((B_pad, ACTION_PAD), jnp.float32),
        grid_spec=pl.GridSpec(
            grid=(B_pad // TB,),
            in_specs=[
                pl.BlockSpec((TB, STATE_SIZE), lambda i: (i, 0)),
                pl.BlockSpec((STATE_SIZE, FC1_PAD), const),
                pl.BlockSpec((1, FC1_PAD), const),
                pl.BlockSpec((FC1_PAD, FC2_PAD), const),
                pl.BlockSpec((1, FC2_PAD), const),
                pl.BlockSpec((FC2_PAD, ACTION_PAD), const),
                pl.BlockSpec((1, ACTION_PAD), const),
            ],
            out_specs=pl.BlockSpec((TB, ACTION_PAD), lambda i: (i, 0)),
        ),
        compiler_params=pltpu.CompilerParams(
            dimension_semantics=("parallel",),      # batch tiles shard across TCs on v7x
            vmem_limit_bytes=32 * 1024 * 1024,      # safe on v5e/v6e/v7x; fused body fits easily
        ),
        cost_estimate=pl.CostEstimate(
            flops=flops, transcendentals=0, bytes_accessed=bytes_accessed),
    )(x, w1, b1, w2, b2, w3, b3)
    return out[:B, :ACTION_SIZE]


def reference_forward(x, params):
    """Same math (bf16 weights, f32 accumulation) in plain JAX, for validation."""
    w1, b1, w2, b2, w3, b3 = params
    xb = x.astype(jnp.float32).astype(jnp.bfloat16)
    h1 = jnp.maximum(jnp.dot(xb, w1, preferred_element_type=jnp.float32) + b1, 0.0)
    h2 = jnp.maximum(
        jnp.dot(h1.astype(jnp.bfloat16), w2, preferred_element_type=jnp.float32) + b2, 0.0)
    out = jnp.dot(h2, w3, preferred_element_type=jnp.float32) + b3
    return out[:, :ACTION_SIZE]


def init_linear_params_pt(key, fan_in, fan_out):
    """PyTorch nn.Linear default init, in PyTorch layout (out_features, in_features)."""
    kw, kb = jax.random.split(key)
    bound = 1.0 / math.sqrt(fan_in)
    w = jax.random.uniform(kw, (fan_out, fan_in), jnp.float32, -bound, bound)
    b = jax.random.uniform(kb, (fan_out,), jnp.float32, -bound, bound)
    return w, b


if __name__ == "__main__":
    key = jax.random.PRNGKey(0)
    k_x, k_xl, k1, k2, k3 = jax.random.split(key, 5)

    w1_pt, b1_pt = init_linear_params_pt(k1, STATE_SIZE, FC1_UNIT)   # fc1: 8 -> 4000
    w2_pt, b2_pt = init_linear_params_pt(k2, FC1_UNIT, FC2_UNIT)     # fc2: 4000 -> 8
    w3_pt, b3_pt = init_linear_params_pt(k3, FC2_UNIT, ACTION_SIZE)  # fc4: 8 -> 4

    params = prepare_params(w1_pt, b1_pt, w2_pt, b2_pt, w3_pt, b3_pt)  # prepared once, reused

    # Small inference-style batch (single grid step, TB = 8).
    batch = 2
    x = jax.random.normal(k_x, (batch, STATE_SIZE), jnp.float32)
    actions = qnetwork_forward(x, params)
    jax.block_until_ready(actions)
    ref = reference_forward(x, params)
    assert actions.shape == (batch, ACTION_SIZE)
    assert jnp.allclose(actions, ref, atol=1e-3, rtol=1e-3), float(
        jnp.max(jnp.abs(actions - ref)))

    # Replay-buffer-style batch (exercises the 512-row tiles + multi-step grid + padding).
    batch_l = 1000
    x_l = jax.random.normal(k_xl, (batch_l, STATE_SIZE), jnp.float32)
    actions_l = qnetwork_forward(x_l, params)
    jax.block_until_ready(actions_l)
    ref_l = reference_forward(x_l, params)
    assert actions_l.shape == (batch_l, ACTION_SIZE)
    assert jnp.allclose(actions_l, ref_l, atol=1e-3, rtol=1e-3), float(
        jnp.max(jnp.abs(actions_l - ref_l)))

    print("KERNEL_OK")
</pallas_src>

<mosaic_0001>
module attributes {stable_mosaic.version = 11 : i64} {
  func.func @qnetwork_kernel(%arg0: i32, %arg1: memref<8x8xf32, #tpu.memory_space<vmem>>, %arg2: memref<8x4096xbf16, #tpu.memory_space<vmem>>, %arg3: memref<1x4096xf32, #tpu.memory_space<vmem>>, %arg4: memref<4096x128xbf16, #tpu.memory_space<vmem>>, %arg5: memref<1x128xf32, #tpu.memory_space<vmem>>, %arg6: memref<128x128xf32, #tpu.memory_space<vmem>>, %arg7: memref<1x128xf32, #tpu.memory_space<vmem>>, %arg8: memref<8x128xf32, #tpu.memory_space<vmem>>) attributes {dimension_semantics = [#tpu.dimension_semantics<parallel>], iteration_bounds = array<i64: 1>, scalar_prefetch = 0 : i64, scratch_operands = 0 : i64, tpu.core_type = #tpu.core_type<tc>, window_params = [{transform_indices = @transform_0, window_bounds = array<i64: 8, 8>}, {pipeline_mode = #tpu.pipeline_mode<synchronous>, transform_indices = @transform_1, window_bounds = array<i64: 8, 4096>}, {pipeline_mode = #tpu.pipeline_mode<synchronous>, transform_indices = @transform_2, window_bounds = array<i64: 1, 4096>}, {pipeline_mode = #tpu.pipeline_mode<synchronous>, transform_indices = @transform_3, window_bounds = array<i64: 4096, 128>}, {pipeline_mode = #tpu.pipeline_mode<synchronous>, transform_indices = @transform_4, window_bounds = array<i64: 1, 128>}, {pipeline_mode = #tpu.pipeline_mode<synchronous>, transform_indices = @transform_5, window_bounds = array<i64: 128, 128>}, {pipeline_mode = #tpu.pipeline_mode<synchronous>, transform_indices = @transform_6, window_bounds = array<i64: 1, 128>}, {transform_indices = @transform_7, window_bounds = array<i64: 8, 128>}]} {
    %c0 = arith.constant 0 : index
    %c0_0 = arith.constant 0 : index
    %0 = vector.load %arg1[%c0, %c0_0] : memref<8x8xf32, #tpu.memory_space<vmem>>, vector<8x8xf32>
    %1 = arith.truncf %0 : vector<8x8xf32> to vector<8x8xbf16>
    %cst = arith.constant 0.000000e+00 : f32
    %2 = vector.broadcast %cst : f32 to vector<8x128xf32>
    %c0_1 = arith.constant 0 : index
    %c0_2 = arith.constant 0 : index
    %3 = vector.load %arg2[%c0_1, %c0_2] : memref<8x4096xbf16, #tpu.memory_space<vmem>>, vector<8x512xbf16>
    %cst_3 = arith.constant dense<0.000000e+00> : vector<8x512xf32>
    %4 = tpu.matmul %1, %3, %cst_3 {dimension_numbers = #tpu.dot_dimension_numbers<[1], [0], [0], [1], [0, 0, 1, 1], [], []>} : vector<8x8xbf16>, vector<8x512xbf16>, vector<8x512xf32> -> vector<8x512xf32>
    %c0_4 = arith.constant 0 : index
    %c0_5 = arith.constant 0 : index
    %5 = vector.load %arg3[%c0_4, %c0_5] : memref<1x4096xf32, #tpu.memory_space<vmem>>, vector<1x512xf32>
    %6 = vector.broadcast %5 : vector<1x512xf32> to vector<8x512xf32>
    %7 = arith.addf %4, %6 : vector<8x512xf32>
    %cst_6 = arith.constant 0.000000e+00 : f32
    %8 = vector.broadcast %cst_6 : f32 to vector<8x512xf32>
    %9 = arith.maximumf %7, %8 : vector<8x512xf32>
    %10 = arith.truncf %9 : vector<8x512xf32> to vector<8x512xbf16>
    %c0_7 = arith.constant 0 : index
    %c0_8 = arith.constant 0 : index
    %11 = vector.load %arg4[%c0_7, %c0_8] : memref<4096x128xbf16, #tpu.memory_space<vmem>>, vector<512x128xbf16>
    %cst_9 = arith.constant dense<0.000000e+00> : vector<8x128xf32>
    %12 = tpu.matmul %10, %11, %cst_9 {dimension_numbers = #tpu.dot_dimension_numbers<[1], [0], [0], [1], [0, 0, 1, 1], [], []>} : vector<8x512xbf16>, vector<512x128xbf16>, vector<8x128xf32> -> vector<8x128xf32>
    %13 = arith.addf %2, %12 : vector<8x128xf32>
    %c0_10 = arith.constant 0 : index
    %c512 = arith.constant 512 : index
    %14 = vector.load %arg2[%c0_10, %c512] : memref<8x4096xbf16, #tpu.memory_space<vmem>>, vector<8x512xbf16>
    %cst_11 = arith.constant dense<0.000000e+00> : vector<8x512xf32>
    %15 = tpu.matmul %1, %14, %cst_11 {dimension_numbers = #tpu.dot_dimension_numbers<[1], [0], [0], [1], [0, 0, 1, 1], [], []>} : vector<8x8xbf16>, vector<8x512xbf16>, vector<8x512xf32> -> vector<8x512xf32>
    %c0_12 = arith.constant 0 : index
    %c512_13 = arith.constant 512 : index
    %16 = vector.load %arg3[%c0_12, %c512_13] : memref<1x4096xf32, #tpu.memory_space<vmem>>, vector<1x512xf32>
    %17 = vector.broadcast %16 : vector<1x512xf32> to vector<8x512xf32>
    %18 = arith.addf %15, %17 : vector<8x512xf32>
    %cst_14 = arith.constant 0.000000e+00 : f32
    %19 = vector.broadcast %cst_14 : f32 to vector<8x512xf32>
    %20 = arith.maximumf %18, %19 : vector<8x512xf32>
    %21 = arith.truncf %20 : vector<8x512xf32> to vector<8x512xbf16>
    %c512_15 = arith.constant 512 : index
    %c0_16 = arith.constant 0 : index
    %22 = vector.load %arg4[%c512_15, %c0_16] : memref<4096x128xbf16, #tpu.memory_space<vmem>>, vector<512x128xbf16>
    %cst_17 = arith.constant dense<0.000000e+00> : vector<8x128xf32>
    %23 = tpu.matmul %21, %22, %cst_17 {dimension_numbers = #tpu.dot_dimension_numbers<[1], [0], [0], [1], [0, 0, 1, 1], [], []>} : vector<8x512xbf16>, vector<512x128xbf16>, vector<8x128xf32> -> vector<8x128xf32>
    %24 = arith.addf %13, %23 : vector<8x128xf32>
    %c0_18 = arith.constant 0 : index
    %c1024 = arith.constant 1024 : index
    %25 = vector.load %arg2[%c0_18, %c1024] : memref<8x4096xbf16, #tpu.memory_space<vmem>>, vector<8x512xbf16>
    %cst_19 = arith.constant dense<0.000000e+00> : vector<8x512xf32>
    %26 = tpu.matmul %1, %25, %cst_19 {dimension_numbers = #tpu.dot_dimension_numbers<[1], [0], [0], [1], [0, 0, 1, 1], [], []>} : vector<8x8xbf16>, vector<8x512xbf16>, vector<8x512xf32> -> vector<8x512xf32>
    %c0_20 = arith.constant 0 : index
    %c1024_21 = arith.constant 1024 : index
    %27 = vector.load %arg3[%c0_20, %c1024_21] : memref<1x4096xf32, #tpu.memory_space<vmem>>, vector<1x512xf32>
    %28 = vector.broadcast %27 : vector<1x512xf32> to vector<8x512xf32>
    %29 = arith.addf %26, %28 : vector<8x512xf32>
    %cst_22 = arith.constant 0.000000e+00 : f32
    %30 = vector.broadcast %cst_22 : f32 to vector<8x512xf32>
    %31 = arith.maximumf %29, %30 : vector<8x512xf32>
    %32 = arith.truncf %31 : vector<8x512xf32> to vector<8x512xbf16>
    %c1024_23 = arith.constant 1024 : index
    %c0_24 = arith.constant 0 : index
    %33 = vector.load %arg4[%c1024_23, %c0_24] : memref<4096x128xbf16, #tpu.memory_space<vmem>>, vector<512x128xbf16>
    %cst_25 = arith.constant dense<0.000000e+00> : vector<8x128xf32>
    %34 = tpu.matmul %32, %33, %cst_25 {dimension_numbers = #tpu.dot_dimension_numbers<[1], [0], [0], [1], [0, 0, 1, 1], [], []>} : vector<8x512xbf16>, vector<512x128xbf16>, vector<8x128xf32> -> vector<8x128xf32>
    %35 = arith.addf %24, %34 : vector<8x128xf32>
    %c0_26 = arith.constant 0 : index
    %c1536 = arith.constant 1536 : index
    %36 = vector.load %arg2[%c0_26, %c1536] : memref<8x4096xbf16, #tpu.memory_space<vmem>>, vector<8x512xbf16>
    %cst_27 = arith.constant dense<0.000000e+00> : vector<8x512xf32>
    %37 = tpu.matmul %1, %36, %cst_27 {dimension_numbers = #tpu.dot_dimension_numbers<[1], [0], [0], [1], [0, 0, 1, 1], [], []>} : vector<8x8xbf16>, vector<8x512xbf16>, vector<8x512xf32> -> vector<8x512xf32>
    %c0_28 = arith.constant 0 : index
    %c1536_29 = arith.constant 1536 : index
    %38 = vector.load %arg3[%c0_28, %c1536_29] : memref<1x4096xf32, #tpu.memory_space<vmem>>, vector<1x512xf32>
    %39 = vector.broadcast %38 : vector<1x512xf32> to vector<8x512xf32>
    %40 = arith.addf %37, %39 : vector<8x512xf32>
    %cst_30 = arith.constant 0.000000e+00 : f32
    %41 = vector.broadcast %cst_30 : f32 to vector<8x512xf32>
    %42 = arith.maximumf %40, %41 : vector<8x512xf32>
    %43 = arith.truncf %42 : vector<8x512xf32> to vector<8x512xbf16>
    %c1536_31 = arith.constant 1536 : index
    %c0_32 = arith.constant 0 : index
    %44 = vector.load %arg4[%c1536_31, %c0_32] : memref<4096x128xbf16, #tpu.memory_space<vmem>>, vector<512x128xbf16>
    %cst_33 = arith.constant dense<0.000000e+00> : vector<8x128xf32>
    %45 = tpu.matmul %43, %44, %cst_33 {dimension_numbers = #tpu.dot_dimension_numbers<[1], [0], [0], [1], [0, 0, 1, 1], [], []>} : vector<8x512xbf16>, vector<512x128xbf16>, vector<8x128xf32> -> vector<8x128xf32>
    %46 = arith.addf %35, %45 : vector<8x128xf32>
    %c0_34 = arith.constant 0 : index
    %c2048 = arith.constant 2048 : index
    %47 = vector.load %arg2[%c0_34, %c2048] : memref<8x4096xbf16, #tpu.memory_space<vmem>>, vector<8x512xbf16>
    %cst_35 = arith.constant dense<0.000000e+00> : vector<8x512xf32>
    %48 = tpu.matmul %1, %47, %cst_35 {dimension_numbers = #tpu.dot_dimension_numbers<[1], [0], [0], [1], [0, 0, 1, 1], [], []>} : vector<8x8xbf16>, vector<8x512xbf16>, vector<8x512xf32> -> vector<8x512xf32>
    %c0_36 = arith.constant 0 : index
    %c2048_37 = arith.constant 2048 : index
    %49 = vector.load %arg3[%c0_36, %c2048_37] : memref<1x4096xf32, #tpu.memory_space<vmem>>, vector<1x512xf32>
    %50 = vector.broadcast %49 : vector<1x512xf32> to vector<8x512xf32>
    %51 = arith.addf %48, %50 : vector<8x512xf32>
    %cst_38 = arith.constant 0.000000e+00 : f32
    %52 = vector.broadcast %cst_38 : f32 to vector<8x512xf32>
    %53 = arith.maximumf %51, %52 : vector<8x512xf32>
    %54 = arith.truncf %53 : vector<8x512xf32> to vector<8x512xbf16>
    %c2048_39 = arith.constant 2048 : index
    %c0_40 = arith.constant 0 : index
    %55 = vector.load %arg4[%c2048_39, %c0_40] : memref<4096x128xbf16, #tpu.memory_space<vmem>>, vector<512x128xbf16>
    %cst_41 = arith.constant dense<0.000000e+00> : vector<8x128xf32>
    %56 = tpu.matmul %54, %55, %cst_41 {dimension_numbers = #tpu.dot_dimension_numbers<[1], [0], [0], [1], [0, 0, 1, 1], [], []>} : vector<8x512xbf16>, vector<512x128xbf16>, vector<8x128xf32> -> vector<8x128xf32>
    %57 = arith.addf %46, %56 : vector<8x128xf32>
    %c0_42 = arith.constant 0 : index
    %c2560 = arith.constant 2560 : index
    %58 = vector.load %arg2[%c0_42, %c2560] : memref<8x4096xbf16, #tpu.memory_space<vmem>>, vector<8x512xbf16>
    %cst_43 = arith.constant dense<0.000000e+00> : vector<8x512xf32>
    %59 = tpu.matmul %1, %58, %cst_43 {dimension_numbers = #tpu.dot_dimension_numbers<[1], [0], [0], [1], [0, 0, 1, 1], [], []>} : vector<8x8xbf16>, vector<8x512xbf16>, vector<8x512xf32> -> vector<8x512xf32>
    %c0_44 = arith.constant 0 : index
    %c2560_45 = arith.constant 2560 : index
    %60 = vector.load %arg3[%c0_44, %c2560_45] : memref<1x4096xf32, #tpu.memory_space<vmem>>, vector<1x512xf32>
    %61 = vector.broadcast %60 : vector<1x512xf32> to vector<8x512xf32>
    %62 = arith.addf %59, %61 : vector<8x512xf32>
    %cst_46 = arith.constant 0.000000e+00 : f32
    %63 = vector.broadcast %cst_46 : f32 to vector<8x512xf32>
    %64 = arith.maximumf %62, %63 : vector<8x512xf32>
    %65 = arith.truncf %64 : vector<8x512xf32> to vector<8x512xbf16>
    %c2560_47 = arith.constant 2560 : index
    %c0_48 = arith.constant 0 : index
    %66 = vector.load %arg4[%c2560_47, %c0_48] : memref<4096x128xbf16, #tpu.memory_space<vmem>>, vector<512x128xbf16>
    %cst_49 = arith.constant dense<0.000000e+00> : vector<8x128xf32>
    %67 = tpu.matmul %65, %66, %cst_49 {dimension_numbers = #tpu.dot_dimension_numbers<[1], [0], [0], [1], [0, 0, 1, 1], [], []>} : vector<8x512xbf16>, vector<512x128xbf16>, vector<8x128xf32> -> vector<8x128xf32>
    %68 = arith.addf %57, %67 : vector<8x128xf32>
    %c0_50 = arith.constant 0 : index
    %c3072 = arith.constant 3072 : index
    %69 = vector.load %arg2[%c0_50, %c3072] : memref<8x4096xbf16, #tpu.memory_space<vmem>>, vector<8x512xbf16>
    %cst_51 = arith.constant dense<0.000000e+00> : vector<8x512xf32>
    %70 = tpu.matmul %1, %69, %cst_51 {dimension_numbers = #tpu.dot_dimension_numbers<[1], [0], [0], [1], [0, 0, 1, 1], [], []>} : vector<8x8xbf16>, vector<8x512xbf16>, vector<8x512xf32> -> vector<8x512xf32>
    %c0_52 = arith.constant 0 : index
    %c3072_53 = arith.constant 3072 : index
    %71 = vector.load %arg3[%c0_52, %c3072_53] : memref<1x4096xf32, #tpu.memory_space<vmem>>, vector<1x512xf32>
    %72 = vector.broadcast %71 : vector<1x512xf32> to vector<8x512xf32>
    %73 = arith.addf %70, %72 : vector<8x512xf32>
    %cst_54 = arith.constant 0.000000e+00 : f32
    %74 = vector.broadcast %cst_54 : f32 to vector<8x512xf32>
    %75 = arith.maximumf %73, %74 : vector<8x512xf32>
    %76 = arith.truncf %75 : vector<8x512xf32> to vector<8x512xbf16>
    %c3072_55 = arith.constant 3072 : index
    %c0_56 = arith.constant 0 : index
    %77 = vector.load %arg4[%c3072_55, %c0_56] : memref<4096x128xbf16, #tpu.memory_space<vmem>>, vector<512x128xbf16>
    %cst_57 = arith.constant dense<0.000000e+00> : vector<8x128xf32>
    %78 = tpu.matmul %76, %77, %cst_57 {dimension_numbers = #tpu.dot_dimension_numbers<[1], [0], [0], [1], [0, 0, 1, 1], [], []>} : vector<8x512xbf16>, vector<512x128xbf16>, vector<8x128xf32> -> vector<8x128xf32>
    %79 = arith.addf %68, %78 : vector<8x128xf32>
    %c0_58 = arith.constant 0 : index
    %c3584 = arith.constant 3584 : index
    %80 = vector.load %arg2[%c0_58, %c3584] : memref<8x4096xbf16, #tpu.memory_space<vmem>>, vector<8x512xbf16>
    %cst_59 = arith.constant dense<0.000000e+00> : vector<8x512xf32>
    %81 = tpu.matmul %1, %80, %cst_59 {dimension_numbers = #tpu.dot_dimension_numbers<[1], [0], [0], [1], [0, 0, 1, 1], [], []>} : vector<8x8xbf16>, vector<8x512xbf16>, vector<8x512xf32> -> vector<8x512xf32>
    %c0_60 = arith.constant 0 : index
    %c3584_61 = arith.constant 3584 : index
    %82 = vector.load %arg3[%c0_60, %c3584_61] : memref<1x4096xf32, #tpu.memory_space<vmem>>, vector<1x512xf32>
    %83 = vector.broadcast %82 : vector<1x512xf32> to vector<8x512xf32>
    %84 = arith.addf %81, %83 : vector<8x512xf32>
    %cst_62 = arith.constant 0.000000e+00 : f32
    %85 = vector.broadcast %cst_62 : f32 to vector<8x512xf32>
    %86 = arith.maximumf %84, %85 : vector<8x512xf32>
    %87 = arith.truncf %86 : vector<8x512xf32> to vector<8x512xbf16>
    %c3584_63 = arith.constant 3584 : index
    %c0_64 = arith.constant 0 : index
    %88 = vector.load %arg4[%c3584_63, %c0_64] : memref<4096x128xbf16, #tpu.memory_space<vmem>>, vector<512x128xbf16>
    %cst_65 = arith.constant dense<0.000000e+00> : vector<8x128xf32>
    %89 = tpu.matmul %87, %88, %cst_65 {dimension_numbers = #tpu.dot_dimension_numbers<[1], [0], [0], [1], [0, 0, 1, 1], [], []>} : vector<8x512xbf16>, vector<512x128xbf16>, vector<8x128xf32> -> vector<8x128xf32>
    %90 = arith.addf %79, %89 : vector<8x128xf32>
    %c0_66 = arith.constant 0 : index
    %c0_67 = arith.constant 0 : index
    %91 = vector.load %arg5[%c0_66, %c0_67] : memref<1x128xf32, #tpu.memory_space<vmem>>, vector<1x128xf32>
    %92 = vector.broadcast %91 : vector<1x128xf32> to vector<8x128xf32>
    %93 = arith.addf %90, %92 : vector<8x128xf32>
    %cst_68 = arith.constant 0.000000e+00 : f32
    %94 = vector.broadcast %cst_68 : f32 to vector<8x128xf32>
    %95 = arith.maximumf %93, %94 : vector<8x128xf32>
    %c0_69 = arith.constant 0 : index
    %c0_70 = arith.constant 0 : index
    %96 = vector.load %arg6[%c0_69, %c0_70] : memref<128x128xf32, #tpu.memory_space<vmem>>, vector<128x128xf32>
    %cst_71 = arith.constant dense<0.000000e+00> : vector<8x128xf32>
    %97 = tpu.matmul %95, %96, %cst_71 {dimension_numbers = #tpu.dot_dimension_numbers<[1], [0], [0], [1], [0, 0, 1, 1], [], []>} : vector<8x128xf32>, vector<128x128xf32>, vector<8x128xf32> -> vector<8x128xf32>
    %c0_72 = arith.constant 0 : index
    %c0_73 = arith.constant 0 : index
    %98 = vector.load %arg7[%c0_72, %c0_73] : memref<1x128xf32, #tpu.memory_space<vmem>>, vector<1x128xf32>
    %99 = vector.broadcast %98 : vector<1x128xf32> to vector<8x128xf32>
    %100 = arith.addf %97, %99 : vector<8x128xf32>
    %c0_74 = arith.constant 0 : index
    %c0_75 = arith.constant 0 : index
    %101 = vector.load %arg8[%c0_74, %c0_75] : memref<8x128xf32, #tpu.memory_space<vmem>>, vector<8x128xf32>
    tpu.vector_store %arg8[%c0_74, %c0_75], %100 {strides = array<i32>} : memref<8x128xf32, #tpu.memory_space<vmem>>, vector<8x128xf32>,
    return
  }
  func.func @transform_0(%arg0: i32) -> (i32, i32) {
    %c0_i32 = arith.constant 0 : i32
    %c0_i32_0 = arith.constant 0 : i32
    return %arg0, %c0_i32 : i32, i32
  }
  func.func @transform_1(%arg0: i32) -> (i32, i32) {
    %c0_i32 = arith.constant 0 : i32
    %c0_i32_0 = arith.constant 0 : i32
    %c0_i32_1 = arith.constant 0 : i32
    return %c0_i32, %c0_i32_0 : i32, i32
  }
  func.func @transform_2(%arg0: i32) -> (i32, i32) {
    %c0_i32 = arith.constant 0 : i32
    %c0_i32_0 = arith.constant 0 : i32
    %c0_i32_1 = arith.constant 0 : i32
    return %c0_i32, %c0_i32_0 : i32, i32
  }
  func.func @transform_3(%arg0: i32) -> (i32, i32) {
    %c0_i32 = arith.constant 0 : i32
    %c0_i32_0 = arith.constant 0 : i32
    %c0_i32_1 = arith.constant 0 : i32
    return %c0_i32, %c0_i32_0 : i32, i32
  }
  func.func @transform_4(%arg0: i32) -> (i32, i32) {
    %c0_i32 = arith.constant 0 : i32
    %c0_i32_0 = arith.constant 0 : i32
    %c0_i32_1 = arith.constant 0 : i32
    return %c0_i32, %c0_i32_0 : i32, i32
  }
  func.func @transform_5(%arg0: i32) -> (i32, i32) {
    %c0_i32 = arith.constant 0 : i32
    %c0_i32_0 = arith.constant 0 : i32
    %c0_i32_1 = arith.constant 0 : i32
    return %c0_i32, %c0_i32_0 : i32, i32
  }
  func.func @transform_6(%arg0: i32) -> (i32, i32) {
    %c0_i32 = arith.constant 0 : i32
    %c0_i32_0 = arith.constant 0 : i32
    %c0_i32_1 = arith.constant 0 : i32
    return %c0_i32, %c0_i32_0 : i32, i32
  }
  func.func @transform_7(%arg0: i32) -> (i32, i32) {
    %c0_i32 = arith.constant 0 : i32
    %c0_i32_0 = arith.constant 0 : i32
    return %arg0, %c0_i32 : i32, i32
  }
}

</mosaic_0001>

<bundles_post_ra>
// kernel: tpu_custom_call.1
= control target key start
LH: loop header
LB: loop body
LE: loop exit
PB: predicated region body
PF: predicated region fallthrough
CT: control target
= control target key end

     0   :  { %12 = vsyncpa [#allocation3], 0  ;;  %s5112_s0 = inlined_call_operand.hbm [shape: f32[8,8], index: 0, kind: input, shape index: {}]   ;;  %s5113_s1 = inlined_call_operand.hbm [shape: bf16[8,4096], index: 1, kind: input, shape index: {}]   ;;  %s5114_s2 = inlined_call_operand.hbm [shape: f32[1,4096], index: 2, kind: input, shape index: {}]   ;;  %s5115_s3 = inlined_call_operand.hbm [shape: bf16[4096,128], index: 3, kind: input, shape index: {}]   ;;  %s5116_s4 = inlined_call_operand.vmem [shape: f32[1,128], index: 4, kind: input, shape index: {}]   ;;  %s5117_s5 = inlined_call_operand.hbm [shape: f32[128,128], index: 5, kind: input, shape index: {}]   ;;  %s5118_s6 = inlined_call_operand.vmem [shape: f32[1,128], index: 6, kind: input, shape index: {}]   ;;  %s5119_s7 = inlined_call_operand.hbm [shape: f32[8,128], index: 7, kind: output, shape index: {}]  }
   0x1   :  { %13 = vsyncpa [#allocation6], 0 }
   0x2   :  { %14 = vsyncpa [#allocation9], 0  ;;  %s32_s26 = sshll.u32 %s5113_s1, 4  ;;  %s33_s26 = int_to_ptr.hbm [resolvable:$true] %s32_s26 }
   0x3   :  { %15 = vsyncpa [#allocation4], 0  ;;  %s4871_s27 = smov [#allocation5]   ;;  %s53_s8 = sshll.u32 %s5115_s3, 4  ;;  %s54_s8 = int_to_ptr.hbm [resolvable:$true] %s53_s8 }
   0x4   :  { %s34_s28 = sshll.u32 %s4871_s27, 4  ;;  %s4872_s9 = smov [#allocation8]   ;;  %s35_s28 = int_to_ptr.vmem [resolvable:$true] %s34_s28 }
   0x5   :  { %37 = dma.hbm_to_vmem [thread:$0]  %s33_s26, 2048, %s35_s28, [#allocation6]  }
   0x6   :  { %s55_s10 = sshll.u32 %s4872_s9, 4  ;;  %s4873_s11 = smov 64   ;;  %s56_s10 = int_to_ptr.vmem [resolvable:$true] %s55_s10 }
   0x7   :  { %s4874_s12 = smov 4   ;;  %s21_s1 = sshll.u32 %s5112_s0, 4  ;;  %s22_s1 = int_to_ptr.hbm [resolvable:$true] %s21_s1 }
   0x8   :  { %61 = dma.hbm_to_vmem [thread:$0]  %s54_s8, 32768, %s56_s10, [#allocation9], %s4873_s11, %s4873_s11, %s4874_s12  }
   0x9   :  { %s4875_s15 = smov [#allocation2]   ;;  %s43_s3 = sshll.u32 %s5114_s2, 4  ;;  %s44_s3 = int_to_ptr.hbm [resolvable:$true] %s43_s3 }
   0xa   :  { %s23_s16 = sshll.u32 %s4875_s15, 4  ;;  %s4876_s19 = smov [#allocation7]   ;;  %s24_s16 = int_to_ptr.vmem [resolvable:$true] %s23_s16 }
   0xb   :  { %26 = dma.hbm_to_vmem [thread:$0]  %s22_s1, 128, %s24_s16, [#allocation3]  }
   0xc   :  { %s45_s20 = sshll.u32 %s4876_s19, 4  ;;  %s68_s23 = sshll.u32 %s5117_s5, 4  ;;  %s46_s20 = int_to_ptr.vmem [resolvable:$true] %s45_s20  ;;  %s69_s23 = int_to_ptr.hbm [resolvable:$true] %s68_s23 }
   0xd   :  { %48 = dma.hbm_to_vmem [thread:$0]  %s44_s3, 512, %s46_s20, [#allocation6]  }
   0xe   :  { %s4877_s0 = smov [#allocation10]   ;;  %s4878_s25 = smov 128  }
   0xf   :  { %s70_s24 = sshll.u32 %s4877_s0, 4  ;;  %s4879_s26 = smov 8   ;;  %s71_s24 = int_to_ptr.vmem [resolvable:$true] %s70_s24 }
  0x10   :  { %76 = dma.hbm_to_vmem [thread:$0]  %s69_s23, 2048, %s71_s24, [#allocation9], %s4878_s25, %s4878_s25, %s4879_s26  }
  0x11   :  { %4863 = dma.done.wait [#allocation3], 128  }
  0x12   :  { %4864 = vsyncadd [#allocation3], 4294967168 }
  0x13   :  { %4865 = dma.done.wait [#allocation6], 2560  }
  0x14   :  { %4866 = vsyncadd [#allocation6], 4294964736 }
  0x15   :  { %4867 = dma.done.wait [#allocation9], 34816  }
  0x16   :  { %4868 = vsyncadd [#allocation9], 4294932480  ;;  %v102_v0 = vld [vmem:[#allocation5] sm:$0xff]  ;;  %vm128_vm0 = vcmask 1043456   ;;  %v103_v1 = vld [vmem:[#allocation5 + $0x8] sm:$0xff]  ;;  %vm124_vm1 = vcmask 64512  }
  0x17   :  { %v100_v2 = vld [vmem:[#allocation2] sm:$0xff]  ;;  %v116_v3 = vunpack.c.l.b16 %v102_v0  ;;  %v118_v4 = vunpack.c.l.b16 %v103_v1  ;;  %v119_v5 = vunpack.c.h.b16 %v103_v1  ;;  %v265_v8 = vld [vmem:[#allocation5 + $0x10] sm:$0xff]  ;;  %v117_v16 = vunpack.c.h.b16 %v102_v0  ;;  %v4488_v36 = vld [vmem:[#allocation8 + $0x128] sm:$0xff]  ;;  %s4880_s29 = smov [#allocation11]   ;;  %s3383_s10 = sshll.u32 %s5119_s7, 4  ;;  %s3384_s10 = int_to_ptr.hbm [resolvable:$true] %s3383_s10 }
  0x18   :  { %v4936_v6 = vpack.c.bf16 %v100_v2, %v100_v2  ;;  %v266_v7 = vld [vmem:[#allocation5 + $0x18] sm:$0xff]  ;;  %v279_v11 = vunpack.c.l.b16 %v265_v8  ;;  %v280_v12 = vunpack.c.h.b16 %v265_v8  ;;  %v4489_v33 = vld [vmem:[#allocation8 + $0x130] sm:$0xff]  ;;  %v4504_v37 = vld [vmem:[#allocation8 + $0x1a8] sm:$0xff]  ;;  %s3381_s30 = sshll.u32 %s4880_s29, 4  ;;  %s3382_s30 = int_to_ptr.vmem [resolvable:$true] %s3381_s30 }
  0x19   :  { %v281_v9 = vunpack.c.l.b16 %v266_v7  ;;  %v282_v10 = vunpack.c.h.b16 %v266_v7  ;;  %v120_v13 = vpack.c.b16 %v116_v3, %v116_v3  ;;  %v122_v14 = vpack.c.b16 %v118_v4, %v118_v4  ;;  %v4490_v30 = vld [vmem:[#allocation8 + $0x138] sm:$0xff]  ;;  %v4505_v34 = vld [vmem:[#allocation8 + $0x1b0] sm:$0xff]  ;;  %v4512_v38 = vld [vmem:[#allocation8 + $0x1e8] sm:$0xff] }
  0x1a   :  { %v123_v15 = vpack.c.b16 %v119_v5, %v119_v5  ;;  %v283_v19 = vpack.c.b16 %v279_v11, %v279_v11  ;;  %v284_v20 = vpack.c.b16 %v280_v12, %v280_v12  ;;  %v121_v24 = vpack.c.b16 %v117_v16, %v117_v16  ;;  %v4506_v31 = vld [vmem:[#allocation8 + $0x1b8] sm:$0xff]  ;;  %v4513_v35 = vld [vmem:[#allocation8 + $0x1f0] sm:$0xff]  ;;  %v4487_v39 = vld [vmem:[#allocation8 + $0x120] sm:$0xff] }
  0x1b   :  { %v285_v17 = vpack.c.b16 %v281_v9, %v281_v9  ;;  %v286_v18 = vpack.c.b16 %v282_v10, %v282_v10  ;;  %v130_v21 = vsel %vm128_vm0, %v120_v13, 0  ;;  %v136_v22 = vsel %vm128_vm0, %v122_v14, 0  ;;  %v4514_v32 = vld [vmem:[#allocation8 + $0x1f8] sm:$0xff]  ;;  %v4503_v40 = vld [vmem:[#allocation8 + $0x1a0] sm:$0xff]  ;;  %v4497_v44 = vld [vmem:[#allocation8 + $0x170] sm:$0xff] }
  0x1c   :  { %v139_v23 = vsel %vm128_vm0, %v123_v15, 0  ;;  %148 = vmatpush.bf16.msra.mxu1 %v130_v21  ;;  %174 = vmatpush.bf16.msra.mxu2 %v136_v22  ;;  %v288_v27 = vsel %vm128_vm0, %v283_v19, 0  ;;  %v133_v28 = vsel %vm128_vm0, %v121_v24, 0  ;;  %v291_v29 = vsel %vm128_vm0, %v284_v20, 0  ;;  %v4498_v41 = vld [vmem:[#allocation8 + $0x178] sm:$0xff]  ;;  %v4511_v42 = vld [vmem:[#allocation8 + $0x1e0] sm:$0xff] }
  0x1d   :  { %v294_v25 = vsel %vm128_vm0, %v285_v17, 0  ;;  %v297_v26 = vsel %vm128_vm0, %v286_v18, 0  ;;  %187 = vmatpush.bf16.msra.mxu3 %v139_v23  ;;  %306 = vmatpush.bf16.msra.mxu0 %v288_v27  ;;  %v4486_v43 = vld [vmem:[#allocation8 + $0x118] sm:$0xff]  ;;  %v4485_v45 = vld [vmem:[#allocation8 + $0x110] sm:$0xff]  ;;  %v4484_v46 = vld [vmem:[#allocation8 + $0x108] sm:$0xff] }
  0x1e   :  { %v4483_v47 = vld [vmem:[#allocation8 + $0x100] sm:$0xff]  ;;  %v4458_v48 = vld [vmem:[#allocation8 + $0x38] sm:$0xff]  ;;  %v4457_v51 = vld [vmem:[#allocation8 + $0x30] sm:$0xff] }
  0x1f   :  { %3395 = vmatmul.msk.bf16.vlgmr.msra.gmra.mxu1 %vm124_vm1, %v4936_v6  ;;  %3397 = vmatmul.msk.bf16.vlgmr.msra.gmra.mxu2 %vm124_vm1, %v4936_v6  ;;  %v4502_v49 = vld [vmem:[#allocation8 + $0x198] sm:$0xff]  ;;  %v4496_v52 = vld [vmem:[#allocation8 + $0x168] sm:$0xff]  ;;  %v4501_v53 = vld [vmem:[#allocation8 + $0x190] sm:$0xff] }
  0x20   :  { %332 = vmatpush.bf16.msrb.mxu2 %v294_v25  ;;  %3398 = vmatmul.msk.bf16.vlgmr.msra.gmra.mxu3 %vm124_vm1, %v4936_v6  ;;  %v4510_v50 = vld [vmem:[#allocation8 + $0x1d8] sm:$0xff]  ;;  %v4509_v54 = vld [vmem:[#allocation8 + $0x1d0] sm:$0xff]  ;;  %v4456_v55 = vld [vmem:[#allocation8 + $0x28] sm:$0xff] }
  0x21   :  { %345 = vmatpush.bf16.msrb.mxu3 %v297_v26  ;;  %161 = vmatpush.bf16.msrb.mxu1 %v133_v28  ;;  %v4495_v56 = vld [vmem:[#allocation8 + $0x160] sm:$0xff]  ;;  %v4500_v57 = vld [vmem:[#allocation8 + $0x188] sm:$0xff]  ;;  %v4494_v60 = vld [vmem:[#allocation8 + $0x158] sm:$0xff] }
  0x22   :  { %3399 = vmatmul.msk.bf16.vlgmr.msra.gmra.mxu0 %vm124_vm1, %v4936_v6  ;;  %v4508_v58 = vld [vmem:[#allocation8 + $0x1c8] sm:$0xff]  ;;  %v4455_v59 = vld [vmem:[#allocation8 + $0x20] sm:$0xff]  ;;  %v4454_v63 = vld [vmem:[#allocation8 + $0x18] sm:$0xff] }
  0x23   :  { %615 = vmatpush.bf16.msrb.mxu0 %v4490_v30  ;;  %v4499_v61 = vld [vmem:[#allocation8 + $0x180] sm:$0xff]  ;;  %v4474_v0 = vld [vmem:[#allocation8 + $0xb8] sm:$0xff]  ;;  %v4493_v2 = vld [vmem:[#allocation8 + $0x150] sm:$0xff] }
  0x24   :  { %641 = vmatpush.bf16.msra.mxu2 %v4506_v31  ;;  %v4507_v62 = vld [vmem:[#allocation8 + $0x1c0] sm:$0xff]  ;;  %v4482_v1 = vld [vmem:[#allocation8 + $0xf8] sm:$0xff]  ;;  %v4453_v3 = vld [vmem:[#allocation8 + $0x10] sm:$0xff] }
  0x25   :  { %319 = vmatpush.bf16.msra.mxu1 %v291_v29  ;;  %654 = vmatpush.bf16.msra.mxu3 %v4514_v32  ;;  %v4473_v4 = vld [vmem:[#allocation8 + $0xb0] sm:$0xff]  ;;  %v4492_v7 = vld [vmem:[#allocation8 + $0x148] sm:$0xff]  ;;  %v4491_v11 = vld [vmem:[#allocation8 + $0x140] sm:$0xff] }
  0x26   :  { %v4481_v5 = vld [vmem:[#allocation8 + $0xf0] sm:$0xff]  ;;  %v4452_v8 = vld [vmem:[#allocation8 + $0x8] sm:$0xff]  ;;  %v4466_v12 = vld [vmem:[#allocation8 + $0x78] sm:$0xff] }
  0x27   :  { %616 = vmatpush.bf16.msrb.mxu0 %v4489_v33  ;;  %v4472_v9 = vld [vmem:[#allocation8 + $0xa8] sm:$0xff]  ;;  %v4451_v13 = vld [vmem:[#allocation8] sm:$0xff]  ;;  %v4465_v16 = vld [vmem:[#allocation8 + $0x70] sm:$0xff] }
  0x28   :  { %642 = vmatpush.bf16.msra.mxu2 %v4505_v34  ;;  %v4480_v10 = vld [vmem:[#allocation8 + $0xe8] sm:$0xff]  ;;  %v4471_v14 = vld [vmem:[#allocation8 + $0xa0] sm:$0xff]  ;;  %v4470_v18 = vld [vmem:[#allocation8 + $0x98] sm:$0xff] }
  0x29   :  { %655 = vmatpush.bf16.msra.mxu3 %v4513_v35  ;;  %v4479_v15 = vld [vmem:[#allocation8 + $0xe0] sm:$0xff]  ;;  %v4478_v19 = vld [vmem:[#allocation8 + $0xd8] sm:$0xff]  ;;  %v4464_v21 = vld [vmem:[#allocation8 + $0x68] sm:$0xff] }
  0x2a   :  { %v4962_v17 = vld [vmem:[#allocation7 + $0x4] sm:$0xf]  ;;  %v4469_v23 = vld [vmem:[#allocation8 + $0x90] sm:$0xff]  ;;  %v4468_v29 = vld [vmem:[#allocation8 + $0x88] sm:$0xff] }
  0x2b   :  { %617 = vmatpush.bf16.msrb.mxu0 %v4488_v36  ;;  %v269_v20 = vperm.slane %v4962_v17, 0  ;;  %v4477_v24 = vld [vmem:[#allocation8 + $0xd0] sm:$0xff]  ;;  %v4463_v27 = vld [vmem:[#allocation8 + $0x60] sm:$0xff]  ;;  %v4476_v30 = vld [vmem:[#allocation8 + $0xc8] sm:$0xff] }
  0x2c   :  { %643 = vmatpush.bf16.msra.mxu2 %v4504_v37  ;;  %v4462_v34 = vld [vmem:[#allocation8 + $0x58] sm:$0xff]  ;;  %v4467_v35 = vld [vmem:[#allocation8 + $0x80] sm:$0xff] }
  0x2d   :  { %656 = vmatpush.bf16.msra.mxu3 %v4512_v38  ;;  %v4969_v36 = vld [vmem:[#allocation7] sm:$0xf] }
  0x2e   :  { %v4475_v38 = vld [vmem:[#allocation8 + $0xc0] sm:$0xff] }
  0x2f   :  { %618 = vmatpush.bf16.msrb.mxu0 %v4487_v39  ;;  %3396 = vmatmul.msk.bf16.vlgmr.msrb.gmra.mxu1 %vm124_vm1, %v4936_v6  ;;  %v106_v39 = vperm.slane %v4969_v36, 0 }
  0x30   :  { %644 = vmatpush.bf16.msra.mxu2 %v4503_v40  ;;  %3402 = vmatmul.msk.bf16.vlgmr.msrb.gmra.mxu3 %vm124_vm1, %v4936_v6  ;;  %v4461_v40 = vld [vmem:[#allocation8 + $0x50] sm:$0xff] }
  0x31   :  { %3401 = vmatmul.msk.bf16.vlgmr.msrb.gmra.mxu2 %vm124_vm1, %v4936_v6  ;;  %628 = vmatpush.bf16.msrb.mxu1 %v4498_v41 }
  0x32   :  { %657 = vmatpush.bf16.msra.mxu3 %v4511_v42 }
  0x33   :  { %619 = vmatpush.bf16.msrb.mxu0 %v4486_v43 }
  0x34   :  { %645 = vmatpush.bf16.msra.mxu2 %v4502_v49  ;;  %v4459_v49 = vld [vmem:[#allocation8 + $0x40] sm:$0xff] }
  0x35   :  { %629 = vmatpush.bf16.msrb.mxu1 %v4497_v44  ;;  %v4460_v44 = vld [vmem:[#allocation8 + $0x48] sm:$0xff] }
  0x36   :  { %658 = vmatpush.bf16.msra.mxu3 %v4510_v50  ;;  %v271_v50 = vperm.slane %v4962_v17, 2 }
  0x37   :  { %620 = vmatpush.bf16.msrb.mxu0 %v4485_v45 }
  0x38   :  { %646 = vmatpush.bf16.msra.mxu2 %v4501_v53 }
  0x39   :  { %630 = vmatpush.bf16.msrb.mxu1 %v4496_v52  ;;  %v272_v52 = vperm.slane %v4962_v17, 3 }
  0x3a   :  { %659 = vmatpush.bf16.msra.mxu3 %v4509_v54 }
  0x3b   :  { %621 = vmatpush.bf16.msrb.mxu0 %v4484_v46 }
  0x3c   :  { %647 = vmatpush.bf16.msra.mxu2 %v4500_v57 }
  0x3d   :  { %631 = vmatpush.bf16.msrb.mxu1 %v4495_v56 }
  0x3e   :  { %660 = vmatpush.bf16.msra.mxu3 %v4508_v58 }
  0x3f   :  { %622 = vmatpush.bf16.msrb.mxu0 %v4483_v47  ;;  %3400 = vmatmul.msk.bf16.vlgmr.msra.gmra.mxu1 %vm124_vm1, %v4936_v6  ;;  %v912_v47 = vld [vmem:[#allocation5 + $0x28] sm:$0xff] }
  0x40   :  { %648 = vmatpush.bf16.msra.mxu2 %v4499_v61  ;;  %v928_v53 = vunpack.c.h.b16 %v912_v47 }
  0x41   :  { %632 = vmatpush.bf16.msrb.mxu1 %v4494_v60 }
  0x42   :  { %661 = vmatpush.bf16.msra.mxu3 %v4507_v62  ;;  %v932_v61 = vpack.c.b16 %v928_v53, %v928_v53  ;;  %v4518_v53 = vld [vmem:[#allocation8 + $0x218] sm:$0xff] }
  0x43   :  { %859 = vmatpush.bf16.msra.mxu0 %v4458_v48 }
  0x44   :  { %885 = vmatpush.bf16.msrb.mxu2 %v4474_v0 }
  0x45   :  { %633 = vmatpush.bf16.msrb.mxu1 %v4493_v2 }
  0x46   :  { %898 = vmatpush.bf16.msrb.mxu3 %v4482_v1 }
  0x47   :  { %860 = vmatpush.bf16.msra.mxu0 %v4457_v51  ;;  %v927_v51 = vunpack.c.l.b16 %v912_v47  ;;  %v4543_v47 = vld [vmem:[#allocation8 + $0x2e0] sm:$0xff] }
  0x48   :  { %886 = vmatpush.bf16.msrb.mxu2 %v4473_v4  ;;  %v270_v4 = vperm.slane %v4962_v17, 1 }
  0x49   :  { %634 = vmatpush.bf16.msrb.mxu1 %v4492_v7  ;;  %v931_v58 = vpack.c.b16 %v927_v51, %v927_v51  ;;  %v911_v7 = vld [vmem:[#allocation5 + $0x20] sm:$0xff]  ;;  %v4534_v51 = vld [vmem:[#allocation8 + $0x298] sm:$0xff] }
  0x4a   :  { %899 = vmatpush.bf16.msrb.mxu3 %v4481_v5 }
  0x4b   :  { %861 = vmatpush.bf16.msra.mxu0 %v4456_v55  ;;  %v940_v1 = vsel %vm128_vm0, %v931_v58, 0  ;;  %v4517_v58 = vld [vmem:[#allocation8 + $0x210] sm:$0xff] }
  0x4c   :  { %887 = vmatpush.bf16.msrb.mxu2 %v4472_v9 }
  0x4d   :  { %635 = vmatpush.bf16.msrb.mxu1 %v4491_v11  ;;  %v926_v11 = vunpack.c.h.b16 %v911_v7 }
  0x4e   :  { %900 = vmatpush.bf16.msrb.mxu3 %v4480_v10  ;;  %v925_v10 = vunpack.c.l.b16 %v911_v7  ;;  %v4539_v7 = vld [vmem:[#allocation8 + $0x2c0] sm:$0xff] }
  0x4f   :  { %862 = vmatpush.bf16.msra.mxu0 %v4455_v59 }
  0x50   :  { %888 = vmatpush.bf16.msrb.mxu2 %v4471_v14 }
  0x51   :  { %872 = vmatpush.bf16.msra.mxu1 %v4466_v12  ;;  %v109_v12 = vperm.slane %v4969_v36, 3 }
  0x52   :  { %901 = vmatpush.bf16.msrb.mxu3 %v4479_v15  ;;  %v929_v15 = vpack.c.b16 %v925_v10, %v925_v10 }
  0x53   :  { %863 = vmatpush.bf16.msra.mxu0 %v4454_v63 }
  0x54   :  { %889 = vmatpush.bf16.msrb.mxu2 %v4470_v18  ;;  %v934_v17 = vsel %vm128_vm0, %v929_v15, 0 }
  0x55   :  { %873 = vmatpush.bf16.msra.mxu1 %v4465_v16  ;;  %v930_v16 = vpack.c.b16 %v926_v11, %v926_v11 }
  0x56   :  { %902 = vmatpush.bf16.msrb.mxu3 %v4478_v19 }
  0x57   :  { %864 = vmatpush.bf16.msra.mxu0 %v4453_v3  ;;  %v943_v3 = vsel %vm128_vm0, %v932_v61, 0 }
  0x58   :  { %890 = vmatpush.bf16.msrb.mxu2 %v4469_v23 }
  0x59   :  { %874 = vmatpush.bf16.msra.mxu1 %v4464_v21 }
  0x5a   :  { %903 = vmatpush.bf16.msrb.mxu3 %v4477_v24 }
  0x5b   :  { %865 = vmatpush.bf16.msra.mxu0 %v4452_v8  ;;  %v108_v8 = vperm.slane %v4969_v36, 2 }
  0x5c   :  { %891 = vmatpush.bf16.msrb.mxu2 %v4468_v29 }
  0x5d   :  { %875 = vmatpush.bf16.msra.mxu1 %v4463_v27 }
  0x5e   :  { %904 = vmatpush.bf16.msrb.mxu3 %v4476_v30 }
  0x5f   :  { %866 = vmatpush.bf16.msra.mxu0 %v4451_v13 }
  0x60   :  { %892 = vmatpush.bf16.msrb.mxu2 %v4467_v35  ;;  %v4522_v35 = vld [vmem:[#allocation8 + $0x238] sm:$0xff] }
  0x61   :  { %876 = vmatpush.bf16.msra.mxu1 %v4462_v34  ;;  %v4546_v34 = vld [vmem:[#allocation8 + $0x2f8] sm:$0xff] }
  0x62   :  { %905 = vmatpush.bf16.msrb.mxu3 %v4475_v38  ;;  %v4545_v38 = vld [vmem:[#allocation8 + $0x2f0] sm:$0xff] }
  0x65   :  { %877 = vmatpush.bf16.msra.mxu1 %v4461_v40  ;;  %v4521_v40 = vld [vmem:[#allocation8 + $0x230] sm:$0xff] }
  0x69   :  { %878 = vmatpush.bf16.msra.mxu1 %v4460_v44  ;;  %v4520_v44 = vld [vmem:[#allocation8 + $0x228] sm:$0xff] }
  0x6d   :  { %879 = vmatpush.bf16.msra.mxu1 %v4459_v49  ;;  %v4519_v49 = vld [vmem:[#allocation8 + $0x220] sm:$0xff] }
  0x9c   :  { %v150_v22 = vpop.f32.mrf.mxu1 }
  0x9d   :  { %v151_v42 = vadd.f32 %v150_v22, %v106_v39  ;;  %v937_v22 = vsel %vm128_vm0, %v930_v16, 0 }
  0x9f   :  { %v308_v25 = vpop.f32.mrf.mxu0  ;;  %v193_v48 = vmax.f32 %v151_v42, 0.0  ;;  %v4536_v42 = vld [vmem:[#allocation8 + $0x2a8] sm:$0xff] }
  0xa0   :  { %v309_v26 = vadd.f32 %v308_v25, %v269_v20 }
  0xa1   :  { %v197_v54 = vpack.c.bf16 %v193_v48, %v193_v48 }
  0xa2   :  { %v351_v28 = vmax.f32 %v309_v26, 0.0  ;;  %v4965_v31 = vpop.f32.mrf.mxu2  ;;  %v107_v26 = vperm.slane %v4969_v36, 1  ;;  %v4530_v36 = vld [vmem:[#allocation8 + $0x278] sm:$0xff] }
  0xa3   :  { %v4967_v32 = vpop.f32.mrf.mxu3  ;;  %v177_v18 = vadd.f32 %v4965_v31, %v108_v8 }
  0xa4   :  { %v355_v33 = vpack.c.bf16 %v351_v28, %v351_v28  ;;  %v152_v37 = vpop.f32.mrf.mxu1  ;;  %v190_v20 = vadd.f32 %v4967_v32, %v109_v12  ;;  %v4515_v12 = vld [vmem:[#allocation8 + $0x200] sm:$0xff] }
  0xa5   :  { %v195_v23 = vmax.f32 %v177_v18, 0.0  ;;  %v4537_v37 = vld [vmem:[#allocation8 + $0x2b0] sm:$0xff] }
  0xa6   :  { %623 = vmatmul.bf16.vlgmr.msrb.gmra.mxu0 %v355_v33  ;;  %v196_v24 = vmax.f32 %v190_v20, 0.0  ;;  %v4538_v33 = vld [vmem:[#allocation8 + $0x2b8] sm:$0xff] }
  0xa7   :  { %v310_v41 = vpop.f32.mrf.mxu0  ;;  %952 = vmatpush.bf16.msrb.mxu0 %v934_v17  ;;  %v199_v27 = vpack.c.bf16 %v195_v23, %v195_v23 }
  0xa8   :  { %v200_v28 = vpack.c.bf16 %v196_v24, %v196_v24  ;;  %v4529_v41 = vld [vmem:[#allocation8 + $0x270] sm:$0xff] }
  0xaa   :  { %v178_v43 = vpop.f32.mrf.mxu2 }
  0xab   :  { %v191_v45 = vpop.f32.mrf.mxu3  ;;  %v4544_v43 = vld [vmem:[#allocation8 + $0x2e8] sm:$0xff] }
  0xac   :  { %v163_v46 = vpop.f32.mrf.mxu1  ;;  %v4528_v45 = vld [vmem:[#allocation8 + $0x268] sm:$0xff] }
  0xad   :  { %v164_v29 = vadd.f32 %v163_v46, %v107_v26  ;;  %v4535_v46 = vld [vmem:[#allocation8 + $0x2a0] sm:$0xff] }
  0xaf   :  { %v194_v30 = vmax.f32 %v164_v29, 0.0 }
  0xb1   :  { %v198_v31 = vpack.c.bf16 %v194_v30, %v194_v30 }
  0xb3   :  { %v347_v57 = vpop.f32.mrf.mxu3 }
  0xb4   :  { %v334_v55 = vpop.f32.mrf.mxu2  ;;  %v348_v59 = vadd.f32 %v347_v57, %v272_v52  ;;  %v165_v60 = vpop.f32.mrf.mxu1  ;;  %v4542_v52 = vld [vmem:[#allocation8 + $0x2d8] sm:$0xff] }
  0xb5   :  { %v335_v56 = vadd.f32 %v334_v55, %v271_v50  ;;  %v4527_v50 = vld [vmem:[#allocation8 + $0x260] sm:$0xff]  ;;  %v4533_v55 = vld [vmem:[#allocation8 + $0x290] sm:$0xff]  ;;  %v4532_v60 = vld [vmem:[#allocation8 + $0x288] sm:$0xff] }
  0xb6   :  { %867 = vmatmul.bf16.vlgmr.msra.gmra.mxu0 %v197_v54  ;;  %v354_v63 = vmax.f32 %v348_v59, 0.0  ;;  %v4526_v54 = vld [vmem:[#allocation8 + $0x258] sm:$0xff]  ;;  %v4525_v59 = vld [vmem:[#allocation8 + $0x250] sm:$0xff] }
  0xb7   :  { %v353_v62 = vmax.f32 %v335_v56, 0.0  ;;  %1261 = vmatpush.bf16.msra.mxu0 %v4522_v35  ;;  %v4541_v56 = vld [vmem:[#allocation8 + $0x2d0] sm:$0xff] }
  0xb8   :  { %v358_v2 = vpack.c.bf16 %v354_v63, %v354_v63  ;;  %v1314_v35 = vld [vmem:[#allocation5 + $0x30] sm:$0xff] }
  0xb9   :  { %v357_v0 = vpack.c.bf16 %v353_v62, %v353_v62  ;;  %v4540_v62 = vld [vmem:[#allocation8 + $0x2c8] sm:$0xff] }
  0xba   :  { %662 = vmatmul.bf16.vlgmr.msra.gmra.mxu3 %v358_v2  ;;  %v4524_v2 = vld [vmem:[#allocation8 + $0x248] sm:$0xff] }
  0xbb   :  { %649 = vmatmul.bf16.vlgmr.msra.gmra.mxu2 %v357_v0  ;;  %v349_v9 = vpop.f32.mrf.mxu3  ;;  %991 = vmatpush.bf16.msra.mxu3 %v943_v3  ;;  %v4994_v0 = vld [vmem:[#allocation7 + $0x8] sm:$0xf]  ;;  %v4531_v3 = vld [vmem:[#allocation8 + $0x280] sm:$0xff] }
  0xbc   :  { %v336_v5 = vpop.f32.mrf.mxu2  ;;  %978 = vmatpush.bf16.msra.mxu2 %v940_v1  ;;  %v321_v13 = vpop.f32.mrf.mxu1  ;;  %1262 = vmatpush.bf16.msra.mxu0 %v4521_v40  ;;  %v4516_v1 = vld [vmem:[#allocation8 + $0x208] sm:$0xff] }
  0xbd   :  { %v322_v14 = vadd.f32 %v321_v13, %v270_v4  ;;  %v915_v5 = vperm.slane %v4994_v0, 0  ;;  %v4523_v13 = vld [vmem:[#allocation8 + $0x240] sm:$0xff] }
  0xbf   :  { %v352_v19 = vmax.f32 %v322_v14, 0.0 }
  0xc0   :  { %1263 = vmatpush.bf16.msra.mxu0 %v4520_v44  ;;  %v917_v44 = vperm.slane %v4994_v0, 2 }
  0xc1   :  { %v356_v21 = vpack.c.bf16 %v352_v19, %v352_v19  ;;  %v1315_v19 = vld [vmem:[#allocation5 + $0x38] sm:$0xff] }
  0xc2   :  { %v1330_v17 = vunpack.c.l.b16 %v1315_v19  ;;  %v1331_v20 = vunpack.c.h.b16 %v1315_v19  ;;  %v4574_v19 = vld [vmem:[#allocation8 + $0x3d8] sm:$0xff] }
  0xc3   :  { %636 = vmatmul.bf16.vlgmr.msrb.gmra.mxu1 %v356_v21 }
  0xc4   :  { %v323_v25 = vpop.f32.mrf.mxu1  ;;  %965 = vmatpush.bf16.msrb.mxu1 %v937_v22  ;;  %1264 = vmatpush.bf16.msra.mxu0 %v4519_v49  ;;  %v1334_v24 = vpack.c.b16 %v1330_v17, %v1330_v17 }
  0xc5   :  { %v1335_v25 = vpack.c.b16 %v1331_v20, %v1331_v20  ;;  %v4550_v20 = vld [vmem:[#allocation8 + $0x318] sm:$0xff] }
  0xc6   :  { %3659 = vmatmul.msk.bf16.vlgmr.msrb.gmra.mxu0 %vm124_vm1, %v4936_v6  ;;  %v1343_v26 = vsel %vm128_vm0, %v1334_v24, 0  ;;  %v4549_v24 = vld [vmem:[#allocation8 + $0x310] sm:$0xff] }
  0xc8   :  { %1265 = vmatpush.bf16.msra.mxu0 %v4518_v53 }
  0xca   :  { %906 = vmatmul.bf16.vlgmr.msrb.gmra.mxu3 %v200_v28 }
  0xcb   :  { %893 = vmatmul.bf16.vlgmr.msrb.gmra.mxu2 %v199_v27  ;;  %1300 = vmatpush.bf16.msrb.mxu3 %v4546_v34  ;;  %v1346_v27 = vsel %vm128_vm0, %v1335_v25, 0  ;;  %v4557_v25 = vld [vmem:[#allocation8 + $0x350] sm:$0xff] }
  0xcc   :  { %1287 = vmatpush.bf16.msrb.mxu2 %v4538_v33  ;;  %1266 = vmatpush.bf16.msra.mxu0 %v4517_v58 }
  0xcf   :  { %1301 = vmatpush.bf16.msrb.mxu3 %v4545_v38  ;;  %v1329_v38 = vunpack.c.h.b16 %v1314_v35 }
  0xd0   :  { %1288 = vmatpush.bf16.msrb.mxu2 %v4537_v37  ;;  %1267 = vmatpush.bf16.msra.mxu0 %v4516_v1  ;;  %v1328_v37 = vunpack.c.l.b16 %v1314_v35  ;;  %v4569_v1 = vld [vmem:[#allocation8 + $0x3b0] sm:$0xff] }
  0xd2   :  { %v1332_v40 = vpack.c.b16 %v1328_v37, %v1328_v37  ;;  %v4555_v37 = vld [vmem:[#allocation8 + $0x340] sm:$0xff] }
  0xd3   :  { %880 = vmatmul.bf16.vlgmr.msra.gmra.mxu1 %v198_v31  ;;  %1302 = vmatpush.bf16.msrb.mxu3 %v4544_v43 }
  0xd4   :  { %1274 = vmatpush.bf16.msra.mxu1 %v4530_v36  ;;  %1289 = vmatpush.bf16.msrb.mxu2 %v4536_v42  ;;  %v4554_v42 = vld [vmem:[#allocation8 + $0x338] sm:$0xff] }
  0xd5   :  { %1268 = vmatpush.bf16.msra.mxu0 %v4515_v12  ;;  %v4560_v12 = vld [vmem:[#allocation8 + $0x368] sm:$0xff] }
  0xd7   :  { %1303 = vmatpush.bf16.msrb.mxu3 %v4543_v47  ;;  %v918_v47 = vperm.slane %v4994_v0, 3 }
  0xd8   :  { %1275 = vmatpush.bf16.msra.mxu1 %v4529_v41  ;;  %1290 = vmatpush.bf16.msrb.mxu2 %v4535_v46  ;;  %v1333_v41 = vpack.c.b16 %v1329_v38, %v1329_v38 }
  0xda   :  { %3662 = vmatmul.msk.bf16.vlgmr.msra.gmra.mxu3 %vm124_vm1, %v4936_v6  ;;  %v1340_v46 = vsel %vm128_vm0, %v1333_v41, 0 }
  0xdb   :  { %3661 = vmatmul.msk.bf16.vlgmr.msra.gmra.mxu2 %vm124_vm1, %v4936_v6  ;;  %1304 = vmatpush.bf16.msrb.mxu3 %v4542_v52 }
  0xdc   :  { %1276 = vmatpush.bf16.msra.mxu1 %v4528_v45  ;;  %1291 = vmatpush.bf16.msrb.mxu2 %v4534_v51  ;;  %v1337_v45 = vsel %vm128_vm0, %v1332_v40, 0  ;;  %v916_v51 = vperm.slane %v4994_v0, 1  ;;  %v1718_v40 = vld [vmem:[#allocation5 + $0x48] sm:$0xff] }
  0xdd   :  { %1355 = vmatpush.bf16.msrb.mxu0 %v1337_v45  ;;  %v1733_v41 = vunpack.c.l.b16 %v1718_v40 }
  0xdf   :  { %1305 = vmatpush.bf16.msrb.mxu3 %v4541_v56  ;;  %v4570_v56 = vld [vmem:[#allocation8 + $0x3b8] sm:$0xff] }
  0xe0   :  { %1277 = vmatpush.bf16.msra.mxu1 %v4527_v50  ;;  %1292 = vmatpush.bf16.msrb.mxu2 %v4533_v55 }
  0xe3   :  { %3660 = vmatmul.msk.bf16.vlgmr.msrb.gmra.mxu1 %vm124_vm1, %v4936_v6  ;;  %1306 = vmatpush.bf16.msrb.mxu3 %v4540_v62 }
  0xe4   :  { %1278 = vmatpush.bf16.msra.mxu1 %v4526_v54  ;;  %1293 = vmatpush.bf16.msrb.mxu2 %v4532_v60 }
  0xe7   :  { %1307 = vmatpush.bf16.msrb.mxu3 %v4539_v7  ;;  %v4561_v7 = vld [vmem:[#allocation8 + $0x370] sm:$0xff] }
  0xe8   :  { %1279 = vmatpush.bf16.msra.mxu1 %v4525_v59  ;;  %1294 = vmatpush.bf16.msrb.mxu2 %v4531_v3  ;;  %v4578_v59 = vld [vmem:[#allocation8 + $0x3f8] sm:$0xff]  ;;  %v4577_v3 = vld [vmem:[#allocation8 + $0x3f0] sm:$0xff] }
  0xeb   :  { %1394 = vmatpush.bf16.msra.mxu3 %v1346_v27  ;;  %v4572_v27 = vld [vmem:[#allocation8 + $0x3c8] sm:$0xff] }
  0xec   :  { %1280 = vmatpush.bf16.msra.mxu1 %v4524_v2  ;;  %1381 = vmatpush.bf16.msra.mxu2 %v1343_v26  ;;  %v4564_v26 = vld [vmem:[#allocation8 + $0x388] sm:$0xff] }
  0xf0   :  { %1281 = vmatpush.bf16.msra.mxu1 %v4523_v13  ;;  %v4567_v13 = vld [vmem:[#allocation8 + $0x3a0] sm:$0xff] }
  0xf4   :  { %1368 = vmatpush.bf16.msrb.mxu1 %v1340_v46 }
 0x123   :  { %v4992_v32 = vpop.f32.mrf.mxu0 }
 0x12b   :  { %v626_v39 = vpop.f32.mrf.mxu0 }
 0x133   :  { %v868_v48 = vpop.f32.mrf.mxu0 }
 0x13b   :  { %v870_v57 = vpop.f32.mrf.mxu0 }
 0x13d   :  { %v663_v63 = vpop.f32.mrf.mxu3 }
 0x13e   :  { %v650_v61 = vpop.f32.mrf.mxu2 }
 0x140   :  { %v637_v4 = vpop.f32.mrf.mxu1 }
 0x141   :  { %v638_v8 = vadd.f32 %v637_v4, %v4992_v32 }
 0x143   :  { %v954_v9 = vpop.f32.mrf.mxu0  ;;  %v651_v10 = vadd.f32 %v650_v61, %v638_v8  ;;  %v4568_v8 = vld [vmem:[#allocation8 + $0x3a8] sm:$0xff] }
 0x144   :  { %v955_v11 = vadd.f32 %v954_v9, %v915_v5  ;;  %v4553_v5 = vld [vmem:[#allocation8 + $0x330] sm:$0xff] }
 0x145   :  { %v665_v15 = vpop.f32.mrf.mxu3  ;;  %v664_v16 = vadd.f32 %v663_v63, %v651_v10  ;;  %v4562_v63 = vld [vmem:[#allocation8 + $0x378] sm:$0xff]  ;;  %v4576_v10 = vld [vmem:[#allocation8 + $0x3e8] sm:$0xff] }
 0x146   :  { %v652_v14 = vpop.f32.mrf.mxu2  ;;  %v997_v18 = vmax.f32 %v955_v11, 0.0  ;;  %v4552_v11 = vld [vmem:[#allocation8 + $0x328] sm:$0xff]  ;;  %v4551_v15 = vld [vmem:[#allocation8 + $0x320] sm:$0xff] }
 0x147   :  { %v869_v21 = vadd.f32 %v868_v48, %v664_v16  ;;  %v4575_v14 = vld [vmem:[#allocation8 + $0x3e0] sm:$0xff] }
 0x148   :  { %v1001_v22 = vpack.c.bf16 %v997_v18, %v997_v18  ;;  %v639_v23 = vpop.f32.mrf.mxu1  ;;  %v4559_v16 = vld [vmem:[#allocation8 + $0x360] sm:$0xff]  ;;  %v4566_v18 = vld [vmem:[#allocation8 + $0x398] sm:$0xff] }
 0x149   :  { %v4573_v23 = vld [vmem:[#allocation8 + $0x3d0] sm:$0xff] }
 0x14a   :  { %1269 = vmatmul.bf16.vlgmr.msra.gmra.mxu0 %v1001_v22  ;;  %v4565_v22 = vld [vmem:[#allocation8 + $0x390] sm:$0xff] }
 0x14b   :  { %v956_v28 = vpop.f32.mrf.mxu0  ;;  %1664 = vmatpush.bf16.msra.mxu0 %v4554_v42  ;;  %v1734_v42 = vunpack.c.h.b16 %v1718_v40  ;;  %v4606_v40 = vld [vmem:[#allocation8 + $0x4d8] sm:$0xff] }
 0x14c   :  { %v5017_v28 = vld [vmem:[#allocation7 + $0xc] sm:$0xf] }
 0x14d   :  { %v907_v30 = vpop.f32.mrf.mxu3  ;;  %v1738_v45 = vpack.c.b16 %v1734_v42, %v1734_v42  ;;  %v4590_v42 = vld [vmem:[#allocation8 + $0x458] sm:$0xff] }
 0x14e   :  { %v894_v29 = vpop.f32.mrf.mxu2 }
 0x14f   :  { %1665 = vmatpush.bf16.msra.mxu0 %v4553_v5 }
 0x150   :  { %v881_v31 = vpop.f32.mrf.mxu1 }
 0x151   :  { %v882_v32 = vadd.f32 %v881_v31, %v869_v21  ;;  %v4558_v21 = vld [vmem:[#allocation8 + $0x358] sm:$0xff]  ;;  %v4563_v31 = vld [vmem:[#allocation8 + $0x380] sm:$0xff] }
 0x153   :  { %v895_v33 = vadd.f32 %v894_v29, %v882_v32  ;;  %1666 = vmatpush.bf16.msra.mxu0 %v4552_v11  ;;  %v4548_v29 = vld [vmem:[#allocation8 + $0x308] sm:$0xff]  ;;  %v1318_v32 = vperm.slane %v5017_v28, 0 }
 0x155   :  { %v909_v36 = vpop.f32.mrf.mxu3  ;;  %v5000_v39 = vadd.f32 %v907_v30, %v895_v33  ;;  %v4556_v30 = vld [vmem:[#allocation8 + $0x348] sm:$0xff]  ;;  %v4571_v33 = vld [vmem:[#allocation8 + $0x3c0] sm:$0xff] }
 0x156   :  { %v896_v34 = vpop.f32.mrf.mxu2  ;;  %v4547_v36 = vld [vmem:[#allocation8 + $0x300] sm:$0xff] }
 0x157   :  { %1667 = vmatpush.bf16.msra.mxu0 %v4551_v15 }
 0x158   :  { %v883_v43 = vpop.f32.mrf.mxu1 }
 0x15a   :  { %3791 = vmatmul.msk.bf16.vlgmr.msrb.gmra.mxu0 %vm124_vm1, %v4936_v6 }
 0x15b   :  { %1668 = vmatpush.bf16.msra.mxu0 %v4550_v20 }
 0x15d   :  { %v993_v50 = vpop.f32.mrf.mxu3 }
 0x15e   :  { %v980_v48 = vpop.f32.mrf.mxu2  ;;  %v994_v52 = vadd.f32 %v993_v50, %v918_v47  ;;  %v1749_v47 = vsel %vm128_vm0, %v1738_v45, 0  ;;  %v4581_v45 = vld [vmem:[#allocation8 + $0x410] sm:$0xff] }
 0x15f   :  { %v981_v49 = vadd.f32 %v980_v48, %v917_v44  ;;  %1669 = vmatpush.bf16.msra.mxu0 %v4549_v24  ;;  %v1737_v44 = vpack.c.b16 %v1733_v41, %v1733_v41  ;;  %v4582_v41 = vld [vmem:[#allocation8 + $0x418] sm:$0xff] }
 0x160   :  { %v1000_v54 = vmax.f32 %v994_v52, 0.0  ;;  %v967_v55 = vpop.f32.mrf.mxu1 }
 0x161   :  { %v999_v53 = vmax.f32 %v981_v49, 0.0  ;;  %v968_v58 = vadd.f32 %v967_v55, %v916_v51  ;;  %v1746_v46 = vsel %vm128_vm0, %v1737_v44, 0  ;;  %v4605_v44 = vld [vmem:[#allocation8 + $0x4d0] sm:$0xff] }
 0x162   :  { %v1004_v60 = vpack.c.bf16 %v1000_v54, %v1000_v54 }
 0x163   :  { %v1003_v57 = vpack.c.bf16 %v999_v53, %v999_v53  ;;  %v998_v61 = vmax.f32 %v968_v58, 0.0  ;;  %1670 = vmatpush.bf16.msra.mxu0 %v4548_v29  ;;  %v1717_v58 = vld [vmem:[#allocation5 + $0x40] sm:$0xff]  ;;  %v4600_v29 = vld [vmem:[#allocation8 + $0x4a8] sm:$0xff] }
 0x164   :  { %1308 = vmatmul.bf16.vlgmr.msrb.gmra.mxu3 %v1004_v60  ;;  %v1731_v60 = vunpack.c.l.b16 %v1717_v58 }
 0x165   :  { %1295 = vmatmul.bf16.vlgmr.msrb.gmra.mxu2 %v1003_v57  ;;  %v1002_v0 = vpack.c.bf16 %v998_v61, %v998_v61  ;;  %v995_v2 = vpop.f32.mrf.mxu3  ;;  %1703 = vmatpush.bf16.msrb.mxu3 %v4578_v59  ;;  %v1732_v61 = vunpack.c.h.b16 %v1717_v58  ;;  %v4579_v58 = vld [vmem:[#allocation8 + $0x400] sm:$0xff] }
 0x166   :  { %v982_v62 = vpop.f32.mrf.mxu2  ;;  %1690 = vmatpush.bf16.msrb.mxu2 %v4570_v56  ;;  %v1320_v2 = vperm.slane %v5017_v28, 2 }
 0x167   :  { %1282 = vmatmul.bf16.vlgmr.msra.gmra.mxu1 %v1002_v0  ;;  %1671 = vmatpush.bf16.msra.mxu0 %v4547_v36  ;;  %v1319_v62 = vperm.slane %v5017_v28, 1  ;;  %v4586_v0 = vld [vmem:[#allocation8 + $0x438] sm:$0xff]  ;;  %v4591_v36 = vld [vmem:[#allocation8 + $0x460] sm:$0xff] }
 0x168   :  { %v969_v4 = vpop.f32.mrf.mxu1  ;;  %1677 = vmatpush.bf16.msra.mxu1 %v4562_v63  ;;  %v1735_v63 = vpack.c.b16 %v1731_v60, %v1731_v60 }
 0x169   :  { %1704 = vmatpush.bf16.msrb.mxu3 %v4577_v3 }
 0x16a   :  { %1691 = vmatpush.bf16.msrb.mxu2 %v4569_v1  ;;  %v1736_v1 = vpack.c.b16 %v1732_v61, %v1732_v61  ;;  %v1740_v3 = vsel %vm128_vm0, %v1735_v63, 0 }
 0x16b   :  { %1758 = vmatpush.bf16.msrb.mxu0 %v1740_v3 }
 0x16c   :  { %1678 = vmatpush.bf16.msra.mxu1 %v4561_v7  ;;  %v1743_v4 = vsel %vm128_vm0, %v1736_v1, 0 }
 0x16d   :  { %1705 = vmatpush.bf16.msrb.mxu3 %v4576_v10 }
 0x16e   :  { %1692 = vmatpush.bf16.msrb.mxu2 %v4568_v8 }
 0x170   :  { %1679 = vmatpush.bf16.msra.mxu1 %v4560_v12 }
 0x171   :  { %1706 = vmatpush.bf16.msrb.mxu3 %v4575_v14 }
 0x172   :  { %1693 = vmatpush.bf16.msrb.mxu2 %v4567_v13  ;;  %v4594_v13 = vld [vmem:[#allocation8 + $0x478] sm:$0xff] }
 0x174   :  { %3794 = vmatmul.msk.bf16.vlgmr.msra.gmra.mxu3 %vm124_vm1, %v4936_v6  ;;  %1680 = vmatpush.bf16.msra.mxu1 %v4559_v16 }
 0x175   :  { %3793 = vmatmul.msk.bf16.vlgmr.msra.gmra.mxu2 %vm124_vm1, %v4936_v6  ;;  %1707 = vmatpush.bf16.msrb.mxu3 %v4574_v19 }
 0x176   :  { %1694 = vmatpush.bf16.msrb.mxu2 %v4566_v18  ;;  %v4602_v18 = vld [vmem:[#allocation8 + $0x4b8] sm:$0xff] }
 0x177   :  { %3792 = vmatmul.msk.bf16.vlgmr.msrb.gmra.mxu1 %vm124_vm1, %v4936_v6 }
 0x178   :  { %1681 = vmatpush.bf16.msra.mxu1 %v4558_v21 }
 0x179   :  { %1708 = vmatpush.bf16.msrb.mxu3 %v4573_v23  ;;  %v4601_v23 = vld [vmem:[#allocation8 + $0x4b0] sm:$0xff] }
 0x17a   :  { %1695 = vmatpush.bf16.msrb.mxu2 %v4565_v22 }
 0x17c   :  { %1682 = vmatpush.bf16.msra.mxu1 %v4557_v25  ;;  %v4609_v25 = vld [vmem:[#allocation8 + $0x4f0] sm:$0xff] }
 0x17d   :  { %1709 = vmatpush.bf16.msrb.mxu3 %v4572_v27  ;;  %v4585_v27 = vld [vmem:[#allocation8 + $0x430] sm:$0xff] }
 0x17e   :  { %1696 = vmatpush.bf16.msrb.mxu2 %v4564_v26 }
 0x180   :  { %1683 = vmatpush.bf16.msra.mxu1 %v4556_v30  ;;  %v4608_v30 = vld [vmem:[#allocation8 + $0x4e8] sm:$0xff] }
 0x181   :  { %1710 = vmatpush.bf16.msrb.mxu3 %v4571_v33  ;;  %v4599_v33 = vld [vmem:[#allocation8 + $0x4a0] sm:$0xff] }
 0x182   :  { %1697 = vmatpush.bf16.msrb.mxu2 %v4563_v31  ;;  %v4584_v31 = vld [vmem:[#allocation8 + $0x428] sm:$0xff] }
 0x184   :  { %1684 = vmatpush.bf16.msra.mxu1 %v4555_v37  ;;  %v4598_v37 = vld [vmem:[#allocation8 + $0x498] sm:$0xff] }
 0x185   :  { %1797 = vmatpush.bf16.msra.mxu3 %v1749_v47  ;;  %v4596_v47 = vld [vmem:[#allocation8 + $0x488] sm:$0xff] }
 0x186   :  { %1784 = vmatpush.bf16.msra.mxu2 %v1746_v46  ;;  %v4589_v46 = vld [vmem:[#allocation8 + $0x450] sm:$0xff] }
 0x188   :  { %1771 = vmatpush.bf16.msrb.mxu1 %v1743_v4 }
 0x1c7   :  { %v5015_v9 = vpop.f32.mrf.mxu0 }
 0x1cf   :  { %v1272_v17 = vpop.f32.mrf.mxu0 }
 0x1d0   :  { %v4610_v17 = vld [vmem:[#allocation8 + $0x4f8] sm:$0xff] }
 0x1d7   :  { %v1357_v34 = vpop.f32.mrf.mxu0 }
 0x1d8   :  { %v1358_v35 = vadd.f32 %v1357_v34, %v1318_v32  ;;  %v4592_v32 = vld [vmem:[#allocation8 + $0x468] sm:$0xff]  ;;  %v4607_v34 = vld [vmem:[#allocation8 + $0x4e0] sm:$0xff] }
 0x1da   :  { %v1400_v38 = vmax.f32 %v1358_v35, 0.0  ;;  %v4583_v35 = vld [vmem:[#allocation8 + $0x420] sm:$0xff] }
 0x1dc   :  { %v1404_v43 = vpack.c.bf16 %v1400_v38, %v1400_v38 }
 0x1de   :  { %1672 = vmatmul.bf16.vlgmr.msra.gmra.mxu0 %v1404_v43  ;;  %v4597_v43 = vld [vmem:[#allocation8 + $0x490] sm:$0xff] }
 0x1df   :  { %v1359_v48 = vpop.f32.mrf.mxu0  ;;  %2067 = vmatpush.bf16.msra.mxu0 %v4586_v0 }
 0x1e0   :  { %v4604_v48 = vld [vmem:[#allocation8 + $0x4c8] sm:$0xff] }
 0x1e3   :  { %2068 = vmatpush.bf16.msra.mxu0 %v4585_v27 }
 0x1e4   :  { %v1283_v49 = vpop.f32.mrf.mxu1 }
 0x1e5   :  { %v1284_v50 = vadd.f32 %v1283_v49, %v5015_v9  ;;  %v5039_v49 = vld [vmem:[#allocation7 + $0x10] sm:$0xf] }
 0x1e6   :  { %v1723_v27 = vperm.slane %v5039_v49, 2 }
 0x1e7   :  { %v1309_v53 = vpop.f32.mrf.mxu3  ;;  %2069 = vmatpush.bf16.msra.mxu0 %v4584_v31 }
 0x1e8   :  { %v1296_v51 = vpop.f32.mrf.mxu2 }
 0x1e9   :  { %v1297_v52 = vadd.f32 %v1296_v51, %v1284_v50  ;;  %v4580_v50 = vld [vmem:[#allocation8 + $0x408] sm:$0xff] }
 0x1ea   :  { %v4588_v51 = vld [vmem:[#allocation8 + $0x448] sm:$0xff] }
 0x1eb   :  { %v1310_v54 = vadd.f32 %v1309_v53, %v1297_v52  ;;  %2070 = vmatpush.bf16.msra.mxu0 %v4583_v35  ;;  %v4595_v52 = vld [vmem:[#allocation8 + $0x480] sm:$0xff]  ;;  %v1721_v53 = vperm.slane %v5039_v49, 0 }
 0x1ec   :  { %v1285_v56 = vpop.f32.mrf.mxu1 }
 0x1ed   :  { %v5024_v55 = vadd.f32 %v1310_v54, %v5000_v39  ;;  %v1321_v39 = vperm.slane %v5017_v28, 3  ;;  %v4593_v28 = vld [vmem:[#allocation8 + $0x470] sm:$0xff]  ;;  %v4603_v54 = vld [vmem:[#allocation8 + $0x4c0] sm:$0xff] }
 0x1ee   :  { %3923 = vmatmul.msk.bf16.vlgmr.msrb.gmra.mxu0 %vm124_vm1, %v4936_v6 }
 0x1ef   :  { %v1311_v59 = vpop.f32.mrf.mxu3  ;;  %2071 = vmatpush.bf16.msra.mxu0 %v4582_v41  ;;  %v4642_v41 = vld [vmem:[#allocation8 + $0x5f8] sm:$0xff] }
 0x1f0   :  { %v1298_v57 = vpop.f32.mrf.mxu2  ;;  %v4587_v59 = vld [vmem:[#allocation8 + $0x440] sm:$0xff] }
 0x1f3   :  { %2072 = vmatpush.bf16.msra.mxu0 %v4581_v45 }
 0x1f4   :  { %v1370_v5 = vpop.f32.mrf.mxu1 }
 0x1f5   :  { %v1371_v7 = vadd.f32 %v1370_v5, %v1319_v62  ;;  %v2121_v62 = vld [vmem:[#allocation5 + $0x58] sm:$0xff] }
 0x1f6   :  { %v2136_v1 = vunpack.c.l.b16 %v2121_v62  ;;  %v2137_v0 = vunpack.c.h.b16 %v2121_v62  ;;  %v4614_v62 = vld [vmem:[#allocation8 + $0x518] sm:$0xff] }
 0x1f7   :  { %v1396_v10 = vpop.f32.mrf.mxu3  ;;  %v1401_v11 = vmax.f32 %v1371_v7, 0.0  ;;  %2073 = vmatpush.bf16.msra.mxu0 %v4580_v50  ;;  %v4632_v50 = vld [vmem:[#allocation8 + $0x5a8] sm:$0xff] }
 0x1f8   :  { %v1383_v8 = vpop.f32.mrf.mxu2  ;;  %v1397_v12 = vadd.f32 %v1396_v10, %v1321_v39  ;;  %v2140_v3 = vpack.c.b16 %v2136_v1, %v2136_v1  ;;  %v2141_v4 = vpack.c.b16 %v2137_v0, %v2137_v0  ;;  %v4629_v1 = vld [vmem:[#allocation8 + $0x590] sm:$0xff] }
 0x1f9   :  { %v1384_v9 = vadd.f32 %v1383_v8, %v1320_v2  ;;  %v1405_v15 = vpack.c.bf16 %v1401_v11, %v1401_v11  ;;  %v4637_v0 = vld [vmem:[#allocation8 + $0x5d0] sm:$0xff] }
 0x1fa   :  { %v1403_v16 = vmax.f32 %v1397_v12, 0.0  ;;  %v2149_v39 = vsel %vm128_vm0, %v2140_v3, 0  ;;  %v2152_v5 = vsel %vm128_vm0, %v2141_v4, 0  ;;  %v4621_v3 = vld [vmem:[#allocation8 + $0x550] sm:$0xff]  ;;  %v4628_v4 = vld [vmem:[#allocation8 + $0x588] sm:$0xff] }
 0x1fb   :  { %v1402_v14 = vmax.f32 %v1384_v9, 0.0  ;;  %1685 = vmatmul.bf16.vlgmr.msra.gmra.mxu1 %v1405_v15  ;;  %2074 = vmatpush.bf16.msra.mxu0 %v4579_v58  ;;  %v4623_v58 = vld [vmem:[#allocation8 + $0x560] sm:$0xff] }
 0x1fc   :  { %v1407_v20 = vpack.c.bf16 %v1403_v16, %v1403_v16  ;;  %v1372_v21 = vpop.f32.mrf.mxu1  ;;  %2080 = vmatpush.bf16.msra.mxu1 %v4594_v13 }
 0x1fd   :  { %v1406_v19 = vpack.c.bf16 %v1402_v14, %v1402_v14  ;;  %v1722_v14 = vperm.slane %v5039_v49, 1 }
 0x1fe   :  { %1711 = vmatmul.bf16.vlgmr.msrb.gmra.mxu3 %v1407_v20 }
 0x1ff   :  { %1698 = vmatmul.bf16.vlgmr.msrb.gmra.mxu2 %v1406_v19  ;;  %v1398_v24 = vpop.f32.mrf.mxu3  ;;  %2106 = vmatpush.bf16.msrb.mxu3 %v4610_v17 }
 0x200   :  { %v1385_v22 = vpop.f32.mrf.mxu2  ;;  %2093 = vmatpush.bf16.msrb.mxu2 %v4602_v18  ;;  %2081 = vmatpush.bf16.msra.mxu1 %v4593_v28  ;;  %v2120_v18 = vld [vmem:[#allocation5 + $0x50] sm:$0xff] }
 0x201   :  { %v2134_v20 = vunpack.c.l.b16 %v2120_v18  ;;  %v2135_v21 = vunpack.c.h.b16 %v2120_v18  ;;  %v4611_v18 = vld [vmem:[#allocation8 + $0x500] sm:$0xff] }
 0x203   :  { %2107 = vmatpush.bf16.msrb.mxu3 %v4609_v25  ;;  %v2139_v24 = vpack.c.b16 %v2135_v21, %v2135_v21  ;;  %v4618_v25 = vld [vmem:[#allocation8 + $0x538] sm:$0xff] }
 0x204   :  { %2094 = vmatpush.bf16.msrb.mxu2 %v4601_v23  ;;  %2082 = vmatpush.bf16.msra.mxu1 %v4592_v32  ;;  %v2138_v23 = vpack.c.b16 %v2134_v20, %v2134_v20  ;;  %v2524_v20 = vld [vmem:[#allocation5 + $0x68] sm:$0xff] }
 0x205   :  { %v2539_v21 = vunpack.c.l.b16 %v2524_v20 }
 0x207   :  { %2108 = vmatpush.bf16.msrb.mxu3 %v4608_v30  ;;  %v1724_v30 = vperm.slane %v5039_v49, 3  ;;  %v4625_v49 = vld [vmem:[#allocation8 + $0x570] sm:$0xff] }
 0x208   :  { %2095 = vmatpush.bf16.msrb.mxu2 %v4600_v29  ;;  %2083 = vmatpush.bf16.msra.mxu1 %v4591_v36  ;;  %v2146_v29 = vsel %vm128_vm0, %v2139_v24, 0 }
 0x20b   :  { %3924 = vmatmul.msk.bf16.vlgmr.msrb.gmra.mxu1 %vm124_vm1, %v4936_v6  ;;  %2109 = vmatpush.bf16.msrb.mxu3 %v4607_v34 }
 0x20c   :  { %2096 = vmatpush.bf16.msrb.mxu2 %v4599_v33  ;;  %2084 = vmatpush.bf16.msra.mxu1 %v4590_v42 }
 0x20e   :  { %3926 = vmatmul.msk.bf16.vlgmr.msra.gmra.mxu3 %vm124_vm1, %v4936_v6 }
 0x20f   :  { %3925 = vmatmul.msk.bf16.vlgmr.msra.gmra.mxu2 %vm124_vm1, %v4936_v6  ;;  %2110 = vmatpush.bf16.msrb.mxu3 %v4606_v40 }
 0x210   :  { %2097 = vmatpush.bf16.msrb.mxu2 %v4598_v37  ;;  %2085 = vmatpush.bf16.msra.mxu1 %v4589_v46  ;;  %v4641_v46 = vld [vmem:[#allocation8 + $0x5f0] sm:$0xff] }
 0x213   :  { %2111 = vmatpush.bf16.msrb.mxu3 %v4605_v44  ;;  %v4633_v44 = vld [vmem:[#allocation8 + $0x5b0] sm:$0xff] }
 0x214   :  { %2098 = vmatpush.bf16.msrb.mxu2 %v4597_v43  ;;  %2086 = vmatpush.bf16.msra.mxu1 %v4588_v51  ;;  %v4640_v51 = vld [vmem:[#allocation8 + $0x5e8] sm:$0xff] }
 0x217   :  { %2112 = vmatpush.bf16.msrb.mxu3 %v4604_v48  ;;  %v4617_v48 = vld [vmem:[#allocation8 + $0x530] sm:$0xff] }
 0x218   :  { %2099 = vmatpush.bf16.msrb.mxu2 %v4596_v47  ;;  %2087 = vmatpush.bf16.msra.mxu1 %v4587_v59  ;;  %v4630_v59 = vld [vmem:[#allocation8 + $0x598] sm:$0xff] }
 0x21b   :  { %2113 = vmatpush.bf16.msrb.mxu3 %v4603_v54  ;;  %v4631_v54 = vld [vmem:[#allocation8 + $0x5a0] sm:$0xff] }
 0x21c   :  { %2100 = vmatpush.bf16.msrb.mxu2 %v4595_v52  ;;  %2174 = vmatpush.bf16.msrb.mxu1 %v2146_v29  ;;  %v4616_v52 = vld [vmem:[#allocation8 + $0x528] sm:$0xff] }
 0x21f   :  { %2200 = vmatpush.bf16.msra.mxu3 %v2152_v5 }
 0x220   :  { %2187 = vmatpush.bf16.msra.mxu2 %v2149_v39  ;;  %v4636_v39 = vld [vmem:[#allocation8 + $0x5c8] sm:$0xff] }
 0x25b   :  { %v1673_v26 = vpop.f32.mrf.mxu0 }
 0x263   :  { %v1675_v38 = vpop.f32.mrf.mxu0 }
 0x264   :  { %v4634_v38 = vld [vmem:[#allocation8 + $0x5b8] sm:$0xff] }
 0x26b   :  { %v1760_v56 = vpop.f32.mrf.mxu0 }
 0x26c   :  { %v1761_v57 = vadd.f32 %v1760_v56, %v1721_v53  ;;  %v4624_v53 = vld [vmem:[#allocation8 + $0x568] sm:$0xff]  ;;  %v4639_v56 = vld [vmem:[#allocation8 + $0x5e0] sm:$0xff] }
 0x26e   :  { %v1803_v61 = vmax.f32 %v1761_v57, 0.0  ;;  %v4615_v57 = vld [vmem:[#allocation8 + $0x520] sm:$0xff] }
 0x270   :  { %v1807_v2 = vpack.c.bf16 %v1803_v61, %v1803_v61  ;;  %v4638_v61 = vld [vmem:[#allocation8 + $0x5d8] sm:$0xff] }
 0x272   :  { %2075 = vmatmul.bf16.vlgmr.msra.gmra.mxu0 %v1807_v2  ;;  %v4613_v2 = vld [vmem:[#allocation8 + $0x510] sm:$0xff] }
 0x273   :  { %v1762_v7 = vpop.f32.mrf.mxu0 }
 0x274   :  { %v5060_v7 = vld [vmem:[#allocation7 + $0x14] sm:$0xf] }
 0x278   :  { %v1686_v60 = vpop.f32.mrf.mxu1 }
 0x279   :  { %v1687_v63 = vadd.f32 %v1686_v60, %v1673_v26  ;;  %v4626_v26 = vld [vmem:[#allocation8 + $0x578] sm:$0xff] }
 0x280   :  { %v1688_v9 = vpop.f32.mrf.mxu1 }
 0x281   :  { %v1712_v11 = vpop.f32.mrf.mxu3  ;;  %v4612_v9 = vld [vmem:[#allocation8 + $0x508] sm:$0xff] }
 0x282   :  { %v1699_v8 = vpop.f32.mrf.mxu2 }
 0x283   :  { %v1700_v10 = vadd.f32 %v1699_v8, %v1687_v63  ;;  %v4622_v63 = vld [vmem:[#allocation8 + $0x558] sm:$0xff] }
 0x285   :  { %v1713_v12 = vadd.f32 %v1712_v11, %v1700_v10  ;;  %v4620_v10 = vld [vmem:[#allocation8 + $0x548] sm:$0xff]  ;;  %v4627_v11 = vld [vmem:[#allocation8 + $0x580] sm:$0xff] }
 0x287   :  { %v5045_v13 = vadd.f32 %v1713_v12, %v5024_v55  ;;  %v2143_v55 = vsel %vm128_vm0, %v2138_v23, 0  ;;  %v2124_v12 = vperm.slane %v5060_v7, 0  ;;  %v2523_v23 = vld [vmem:[#allocation5 + $0x60] sm:$0xff] }
 0x288   :  { %v1773_v16 = vpop.f32.mrf.mxu1  ;;  %2161 = vmatpush.bf16.msrb.mxu0 %v2143_v55 }
 0x289   :  { %v1714_v19 = vpop.f32.mrf.mxu3  ;;  %v1774_v17 = vadd.f32 %v1773_v16, %v1722_v14  ;;  %v4635_v14 = vld [vmem:[#allocation8 + $0x5c0] sm:$0xff] }
 0x28a   :  { %v1701_v15 = vpop.f32.mrf.mxu2  ;;  %v4619_v19 = vld [vmem:[#allocation8 + $0x540] sm:$0xff] }
 0x28b   :  { %v1804_v22 = vmax.f32 %v1774_v17, 0.0  ;;  %4055 = vmatmul.msk.bf16.vlgmr.msrb.gmra.mxu0 %vm124_vm1, %v4936_v6 }
 0x28c   :  { %2470 = vmatpush.bf16.msra.mxu0 %v4618_v25 }
 0x28d   :  { %v1808_v28 = vpack.c.bf16 %v1804_v22, %v1804_v22  ;;  %v2540_v22 = vunpack.c.h.b16 %v2524_v20  ;;  %v4654_v20 = vld [vmem:[#allocation8 + $0x658] sm:$0xff] }
 0x28f   :  { %2088 = vmatmul.bf16.vlgmr.msra.gmra.mxu1 %v1808_v28  ;;  %v2543_v28 = vpack.c.b16 %v2539_v21, %v2539_v21  ;;  %v2544_v55 = vpack.c.b16 %v2540_v22, %v2540_v22  ;;  %v4661_v21 = vld [vmem:[#allocation8 + $0x690] sm:$0xff] }
 0x290   :  { %v1775_v32 = vpop.f32.mrf.mxu1  ;;  %2483 = vmatpush.bf16.msra.mxu1 %v4626_v26  ;;  %2471 = vmatpush.bf16.msra.mxu0 %v4617_v48  ;;  %v2537_v26 = vunpack.c.l.b16 %v2523_v23  ;;  %v4650_v48 = vld [vmem:[#allocation8 + $0x638] sm:$0xff]  ;;  %v4669_v22 = vld [vmem:[#allocation8 + $0x6d0] sm:$0xff] }
 0x291   :  { %v1799_v34 = vpop.f32.mrf.mxu3  ;;  %v2555_v32 = vsel %vm128_vm0, %v2544_v55, 0  ;;  %v5081_v55 = vld [vmem:[#allocation7 + $0x18] sm:$0xf] }
 0x292   :  { %v1786_v31 = vpop.f32.mrf.mxu2  ;;  %v1800_v35 = vadd.f32 %v1799_v34, %v1724_v30  ;;  %v2541_v29 = vpack.c.b16 %v2537_v26, %v2537_v26 }
 0x293   :  { %v1787_v33 = vadd.f32 %v1786_v31, %v1723_v27  ;;  %v2538_v27 = vunpack.c.h.b16 %v2523_v23  ;;  %v2552_v31 = vsel %vm128_vm0, %v2543_v28, 0  ;;  %v4645_v23 = vld [vmem:[#allocation8 + $0x610] sm:$0xff]  ;;  %v4668_v28 = vld [vmem:[#allocation8 + $0x6c8] sm:$0xff] }
 0x294   :  { %v1806_v37 = vmax.f32 %v1800_v35, 0.0  ;;  %2484 = vmatpush.bf16.msra.mxu1 %v4625_v49  ;;  %2472 = vmatpush.bf16.msra.mxu0 %v4616_v52  ;;  %v2546_v34 = vsel %vm128_vm0, %v2541_v29, 0  ;;  %v2126_v52 = vperm.slane %v5060_v7, 2  ;;  %v4644_v29 = vld [vmem:[#allocation8 + $0x608] sm:$0xff] }
 0x295   :  { %v1805_v36 = vmax.f32 %v1787_v33, 0.0  ;;  %v2542_v30 = vpack.c.b16 %v2538_v27, %v2538_v27  ;;  %v4660_v27 = vld [vmem:[#allocation8 + $0x688] sm:$0xff] }
 0x296   :  { %v1810_v42 = vpack.c.bf16 %v1806_v37, %v1806_v37 }
 0x297   :  { %v1809_v40 = vpack.c.bf16 %v1805_v36, %v1805_v36  ;;  %v2549_v35 = vsel %vm128_vm0, %v2542_v30, 0  ;;  %v2125_v36 = vperm.slane %v5060_v7, 1  ;;  %v4652_v30 = vld [vmem:[#allocation8 + $0x648] sm:$0xff] }
 0x298   :  { %2114 = vmatmul.bf16.vlgmr.msrb.gmra.mxu3 %v1810_v42  ;;  %2485 = vmatpush.bf16.msra.mxu1 %v4624_v53  ;;  %v2127_v53 = vperm.slane %v5060_v7, 3  ;;  %v4664_v7 = vld [vmem:[#allocation8 + $0x6a8] sm:$0xff] }
 0x299   :  { %2101 = vmatmul.bf16.vlgmr.msrb.gmra.mxu2 %v1809_v40  ;;  %v1801_v45 = vpop.f32.mrf.mxu3  ;;  %2509 = vmatpush.bf16.msrb.mxu3 %v4642_v41 }
 0x29a   :  { %v1788_v43 = vpop.f32.mrf.mxu2  ;;  %2496 = vmatpush.bf16.msrb.mxu2 %v4634_v38  ;;  %2473 = vmatpush.bf16.msra.mxu0 %v4615_v57 }
 0x29c   :  { %2486 = vmatpush.bf16.msra.mxu1 %v4623_v58 }
 0x29d   :  { %2510 = vmatpush.bf16.msrb.mxu3 %v4641_v46 }
 0x29e   :  { %2497 = vmatpush.bf16.msrb.mxu2 %v4633_v44  ;;  %2474 = vmatpush.bf16.msra.mxu0 %v4614_v62  ;;  %v4674_v62 = vld [vmem:[#allocation8 + $0x6f8] sm:$0xff] }
 0x29f   :  { %4056 = vmatmul.msk.bf16.vlgmr.msrb.gmra.mxu1 %vm124_vm1, %v4936_v6 }
 0x2a0   :  { %2487 = vmatpush.bf16.msra.mxu1 %v4622_v63 }
 0x2a1   :  { %2511 = vmatpush.bf16.msrb.mxu3 %v4640_v51 }
 0x2a2   :  { %2498 = vmatpush.bf16.msrb.mxu2 %v4632_v50  ;;  %2475 = vmatpush.bf16.msra.mxu0 %v4613_v2  ;;  %v4658_v50 = vld [vmem:[#allocation8 + $0x678] sm:$0xff] }
 0x2a4   :  { %2488 = vmatpush.bf16.msra.mxu1 %v4621_v3  ;;  %v4673_v3 = vld [vmem:[#allocation8 + $0x6f0] sm:$0xff] }
 0x2a5   :  { %2512 = vmatpush.bf16.msrb.mxu3 %v4639_v56 }
 0x2a6   :  { %2499 = vmatpush.bf16.msrb.mxu2 %v4631_v54  ;;  %2476 = vmatpush.bf16.msra.mxu0 %v4612_v9  ;;  %v4648_v9 = vld [vmem:[#allocation8 + $0x628] sm:$0xff] }
 0x2a8   :  { %4058 = vmatmul.msk.bf16.vlgmr.msra.gmra.mxu3 %vm124_vm1, %v4936_v6  ;;  %2489 = vmatpush.bf16.msra.mxu1 %v4620_v10  ;;  %v4656_v10 = vld [vmem:[#allocation8 + $0x668] sm:$0xff] }
 0x2a9   :  { %4057 = vmatmul.msk.bf16.vlgmr.msra.gmra.mxu2 %vm124_vm1, %v4936_v6  ;;  %2513 = vmatpush.bf16.msrb.mxu3 %v4638_v61 }
 0x2aa   :  { %2500 = vmatpush.bf16.msrb.mxu2 %v4630_v59  ;;  %2477 = vmatpush.bf16.msra.mxu0 %v4611_v18  ;;  %v4670_v18 = vld [vmem:[#allocation8 + $0x6d8] sm:$0xff] }
 0x2ac   :  { %2490 = vmatpush.bf16.msra.mxu1 %v4619_v19 }
 0x2ad   :  { %2514 = vmatpush.bf16.msrb.mxu3 %v4637_v0  ;;  %v4665_v0 = vld [vmem:[#allocation8 + $0x6b0] sm:$0xff] }
 0x2ae   :  { %2501 = vmatpush.bf16.msrb.mxu2 %v4629_v1  ;;  %2564 = vmatpush.bf16.msrb.mxu0 %v2546_v34  ;;  %v4667_v34 = vld [vmem:[#allocation8 + $0x6c0] sm:$0xff] }
 0x2b0   :  { %2577 = vmatpush.bf16.msrb.mxu1 %v2549_v35 }
 0x2b1   :  { %2515 = vmatpush.bf16.msrb.mxu3 %v4636_v39  ;;  %v4657_v39 = vld [vmem:[#allocation8 + $0x670] sm:$0xff] }
 0x2b2   :  { %2502 = vmatpush.bf16.msrb.mxu2 %v4628_v4  ;;  %v4649_v4 = vld [vmem:[#allocation8 + $0x630] sm:$0xff] }
 0x2b5   :  { %2516 = vmatpush.bf16.msrb.mxu3 %v4635_v14  ;;  %v4647_v14 = vld [vmem:[#allocation8 + $0x620] sm:$0xff] }
 0x2b6   :  { %2503 = vmatpush.bf16.msrb.mxu2 %v4627_v11  ;;  %v4663_v11 = vld [vmem:[#allocation8 + $0x6a0] sm:$0xff] }
 0x2b9   :  { %2603 = vmatpush.bf16.msra.mxu3 %v2555_v32 }
 0x2ba   :  { %2590 = vmatpush.bf16.msra.mxu2 %v2552_v31  ;;  %v2527_v31 = vperm.slane %v5081_v55, 0 }
 0x2ef   :  { %v2076_v47 = vpop.f32.mrf.mxu0 }
 0x2f7   :  { %v2078_v60 = vpop.f32.mrf.mxu0 }
 0x2f8   :  { %v4666_v60 = vld [vmem:[#allocation8 + $0x6b8] sm:$0xff] }
 0x308   :  { %v2163_v15 = vpop.f32.mrf.mxu0 }
 0x309   :  { %v2164_v16 = vadd.f32 %v2163_v15, %v2124_v12  ;;  %v4671_v12 = vld [vmem:[#allocation8 + $0x6e0] sm:$0xff] }
 0x30a   :  { %v4655_v15 = vld [vmem:[#allocation8 + $0x660] sm:$0xff] }
 0x30b   :  { %v2206_v17 = vmax.f32 %v2164_v16, 0.0  ;;  %v4662_v16 = vld [vmem:[#allocation8 + $0x698] sm:$0xff] }
 0x30c   :  { %v2089_v5 = vpop.f32.mrf.mxu1 }
 0x30d   :  { %v2090_v8 = vadd.f32 %v2089_v5, %v2076_v47  ;;  %v2210_v25 = vpack.c.bf16 %v2206_v17, %v2206_v17  ;;  %v4646_v17 = vld [vmem:[#allocation8 + $0x618] sm:$0xff] }
 0x30f   :  { %2478 = vmatmul.bf16.vlgmr.msra.gmra.mxu0 %v2210_v25 }
 0x310   :  { %v2165_v33 = vpop.f32.mrf.mxu0  ;;  %2873 = vmatpush.bf16.msra.mxu0 %v4650_v48 }
 0x311   :  { %v4659_v33 = vld [vmem:[#allocation8 + $0x680] sm:$0xff] }
 0x314   :  { %v2091_v24 = vpop.f32.mrf.mxu1  ;;  %2874 = vmatpush.bf16.msra.mxu0 %v4649_v4 }
 0x315   :  { %v4653_v24 = vld [vmem:[#allocation8 + $0x650] sm:$0xff] }
 0x318   :  { %2875 = vmatpush.bf16.msra.mxu0 %v4648_v9  ;;  %v4689_v9 = vld [vmem:[#allocation8 + $0x770] sm:$0xff] }
 0x31b   :  { %v2115_v40 = vpop.f32.mrf.mxu3 }
 0x31c   :  { %v2102_v37 = vpop.f32.mrf.mxu2  ;;  %v2176_v41 = vpop.f32.mrf.mxu1  ;;  %2876 = vmatpush.bf16.msra.mxu0 %v4647_v14 }
 0x31d   :  { %v2103_v38 = vadd.f32 %v2102_v37, %v2090_v8  ;;  %v2177_v43 = vadd.f32 %v2176_v41, %v2125_v36  ;;  %v4672_v8 = vld [vmem:[#allocation8 + $0x6e8] sm:$0xff]  ;;  %v4643_v37 = vld [vmem:[#allocation8 + $0x600] sm:$0xff] }
 0x31f   :  { %v2116_v42 = vadd.f32 %v2115_v40, %v2103_v38  ;;  %v2207_v45 = vmax.f32 %v2177_v43, 0.0  ;;  %4187 = vmatmul.msk.bf16.vlgmr.msrb.gmra.mxu0 %vm124_vm1, %v4936_v6  ;;  %v4651_v38 = vld [vmem:[#allocation8 + $0x640] sm:$0xff]  ;;  %v2528_v43 = vperm.slane %v5081_v55, 1 }
 0x320   :  { %2877 = vmatpush.bf16.msra.mxu0 %v4646_v17  ;;  %v4698_v17 = vld [vmem:[#allocation8 + $0x7b8] sm:$0xff] }
 0x321   :  { %v5069_v44 = vadd.f32 %v2116_v42, %v5045_v13  ;;  %v2211_v46 = vpack.c.bf16 %v2207_v45, %v2207_v45  ;;  %v2927_v42 = vld [vmem:[#allocation5 + $0x78] sm:$0xff] }
 0x322   :  { %v2942_v45 = vunpack.c.l.b16 %v2927_v42 }
 0x323   :  { %v2117_v49 = vpop.f32.mrf.mxu3  ;;  %2491 = vmatmul.bf16.vlgmr.msra.gmra.mxu1 %v2211_v46  ;;  %v2943_v46 = vunpack.c.h.b16 %v2927_v42  ;;  %v4694_v42 = vld [vmem:[#allocation8 + $0x798] sm:$0xff] }
 0x324   :  { %v2104_v47 = vpop.f32.mrf.mxu2  ;;  %v2178_v51 = vpop.f32.mrf.mxu1  ;;  %2886 = vmatpush.bf16.msra.mxu1 %v4658_v50  ;;  %2878 = vmatpush.bf16.msra.mxu0 %v4645_v23  ;;  %v2946_v50 = vpack.c.b16 %v2942_v45, %v2942_v45  ;;  %v2928_v45 = vld [vmem:[#allocation7 + $0x1c] sm:$0xf] }
 0x325   :  { %v2926_v47 = vld [vmem:[#allocation5 + $0x70] sm:$0xff]  ;;  %v2947_v51 = vpack.c.b16 %v2943_v46, %v2943_v46  ;;  %v4676_v46 = vld [vmem:[#allocation8 + $0x708] sm:$0xff] }
 0x326   :  { %v2940_v48 = vunpack.c.l.b16 %v2926_v47  ;;  %v2941_v49 = vunpack.c.h.b16 %v2926_v47  ;;  %v4684_v47 = vld [vmem:[#allocation8 + $0x748] sm:$0xff] }
 0x328   :  { %2887 = vmatpush.bf16.msra.mxu1 %v4657_v39  ;;  %2879 = vmatpush.bf16.msra.mxu0 %v4644_v29  ;;  %v4679_v29 = vld [vmem:[#allocation8 + $0x720] sm:$0xff] }
 0x32b   :  { %v2202_v56 = vpop.f32.mrf.mxu3 }
 0x32c   :  { %v2189_v54 = vpop.f32.mrf.mxu2  ;;  %v2203_v57 = vadd.f32 %v2202_v56, %v2127_v53  ;;  %2888 = vmatpush.bf16.msra.mxu1 %v4656_v10  ;;  %2880 = vmatpush.bf16.msra.mxu0 %v4643_v37  ;;  %v4681_v10 = vld [vmem:[#allocation8 + $0x730] sm:$0xff] }
 0x32d   :  { %v2190_v13 = vadd.f32 %v2189_v54, %v2126_v52  ;;  %v2944_v54 = vpack.c.b16 %v2940_v48, %v2940_v48  ;;  %v2930_v48 = vperm.slane %v2928_v45, 0 }
 0x32e   :  { %v2209_v59 = vmax.f32 %v2203_v57, 0.0  ;;  %v2955_v57 = vsel %vm128_vm0, %v2946_v50, 0  ;;  %v4701_v50 = vld [vmem:[#allocation8 + $0x7d0] sm:$0xff] }
 0x32f   :  { %v2208_v58 = vmax.f32 %v2190_v13, 0.0  ;;  %v2945_v13 = vpack.c.b16 %v2941_v49, %v2941_v49  ;;  %v4693_v49 = vld [vmem:[#allocation8 + $0x790] sm:$0xff] }
 0x330   :  { %v2213_v63 = vpack.c.bf16 %v2209_v59, %v2209_v59  ;;  %2889 = vmatpush.bf16.msra.mxu1 %v4655_v15  ;;  %v2949_v59 = vsel %vm128_vm0, %v2944_v54, 0  ;;  %v4675_v54 = vld [vmem:[#allocation8 + $0x700] sm:$0xff] }
 0x331   :  { %v2212_v61 = vpack.c.bf16 %v2208_v58, %v2208_v58  ;;  %v2958_v58 = vsel %vm128_vm0, %v2947_v51, 0  ;;  %2967 = vmatpush.bf16.msrb.mxu0 %v2949_v59 }
 0x332   :  { %2517 = vmatmul.bf16.vlgmr.msrb.gmra.mxu3 %v2213_v63 }
 0x333   :  { %2504 = vmatmul.bf16.vlgmr.msrb.gmra.mxu2 %v2212_v61  ;;  %v2204_v2 = vpop.f32.mrf.mxu3  ;;  %4188 = vmatmul.msk.bf16.vlgmr.msrb.gmra.mxu1 %vm124_vm1, %v4936_v6 }
 0x334   :  { %v2191_v1 = vpop.f32.mrf.mxu2  ;;  %2899 = vmatpush.bf16.msrb.mxu2 %v4666_v60  ;;  %2912 = vmatpush.bf16.msrb.mxu3 %v4674_v62  ;;  %v2952_v60 = vsel %vm128_vm0, %v2945_v13, 0  ;;  %v4683_v13 = vld [vmem:[#allocation8 + $0x740] sm:$0xff] }
 0x335   :  { %2890 = vmatpush.bf16.msra.mxu1 %v4654_v20 }
 0x338   :  { %2900 = vmatpush.bf16.msrb.mxu2 %v4665_v0  ;;  %2913 = vmatpush.bf16.msrb.mxu3 %v4673_v3 }
 0x339   :  { %2891 = vmatpush.bf16.msra.mxu1 %v4653_v24 }
 0x33c   :  { %2901 = vmatpush.bf16.msrb.mxu2 %v4664_v7  ;;  %2914 = vmatpush.bf16.msrb.mxu3 %v4672_v8  ;;  %v4690_v7 = vld [vmem:[#allocation8 + $0x778] sm:$0xff] }
 0x33d   :  { %2892 = vmatpush.bf16.msra.mxu1 %v4652_v30  ;;  %v4687_v30 = vld [vmem:[#allocation8 + $0x760] sm:$0xff] }
 0x340   :  { %2902 = vmatpush.bf16.msrb.mxu2 %v4663_v11  ;;  %2915 = vmatpush.bf16.msrb.mxu3 %v4671_v12  ;;  %v2529_v11 = vperm.slane %v5081_v55, 2  ;;  %v2530_v12 = vperm.slane %v5081_v55, 3 }
 0x341   :  { %2893 = vmatpush.bf16.msra.mxu1 %v4651_v38 }
 0x342   :  { %4190 = vmatmul.msk.bf16.vlgmr.msra.gmra.mxu3 %vm124_vm1, %v4936_v6 }
 0x343   :  { %4189 = vmatmul.msk.bf16.vlgmr.msra.gmra.mxu2 %vm124_vm1, %v4936_v6 }
 0x344   :  { %2903 = vmatpush.bf16.msrb.mxu2 %v4662_v16  ;;  %2916 = vmatpush.bf16.msrb.mxu3 %v4670_v18 }
 0x345   :  { %2980 = vmatpush.bf16.msrb.mxu1 %v2952_v60  ;;  %v2931_v60 = vperm.slane %v2928_v45, 1 }
 0x348   :  { %2904 = vmatpush.bf16.msrb.mxu2 %v4661_v21  ;;  %2917 = vmatpush.bf16.msrb.mxu3 %v4669_v22  ;;  %v4706_v21 = vld [vmem:[#allocation8 + $0x7f8] sm:$0xff] }
 0x34c   :  { %2905 = vmatpush.bf16.msrb.mxu2 %v4660_v27  ;;  %2918 = vmatpush.bf16.msrb.mxu3 %v4668_v28  ;;  %v4697_v27 = vld [vmem:[#allocation8 + $0x7b0] sm:$0xff] }
 0x34d   :  { %v4705_v28 = vld [vmem:[#allocation8 + $0x7f0] sm:$0xff] }
 0x350   :  { %2906 = vmatpush.bf16.msrb.mxu2 %v4659_v33  ;;  %2919 = vmatpush.bf16.msrb.mxu3 %v4667_v34  ;;  %v4678_v33 = vld [vmem:[#allocation8 + $0x718] sm:$0xff] }
 0x351   :  { %v4686_v34 = vld [vmem:[#allocation8 + $0x758] sm:$0xff] }
 0x354   :  { %2993 = vmatpush.bf16.msra.mxu2 %v2955_v57  ;;  %3006 = vmatpush.bf16.msra.mxu3 %v2958_v58  ;;  %v4700_v58 = vld [vmem:[#allocation8 + $0x7c8] sm:$0xff] }
 0x38c   :  { %v2479_v5 = vpop.f32.mrf.mxu0 }
 0x394   :  { %v2481_v19 = vpop.f32.mrf.mxu0 }
 0x39c   :  { %v2566_v32 = vpop.f32.mrf.mxu0 }
 0x39d   :  { %v2567_v36 = vadd.f32 %v2566_v32, %v2527_v31  ;;  %v4696_v31 = vld [vmem:[#allocation8 + $0x7a8] sm:$0xff] }
 0x39e   :  { %v4704_v32 = vld [vmem:[#allocation8 + $0x7e8] sm:$0xff] }
 0x39f   :  { %v2609_v40 = vmax.f32 %v2567_v36, 0.0 }
 0x3a0   :  { %v2492_v25 = vpop.f32.mrf.mxu1 }
 0x3a1   :  { %v2493_v26 = vadd.f32 %v2492_v25, %v2479_v5  ;;  %v2613_v41 = vpack.c.bf16 %v2609_v40, %v2609_v40  ;;  %v4682_v5 = vld [vmem:[#allocation8 + $0x738] sm:$0xff]  ;;  %v4680_v25 = vld [vmem:[#allocation8 + $0x728] sm:$0xff]  ;;  %v4677_v40 = vld [vmem:[#allocation8 + $0x710] sm:$0xff] }
 0x3a3   :  { %2881 = vmatmul.bf16.vlgmr.msra.gmra.mxu0 %v2613_v41  ;;  %v4685_v41 = vld [vmem:[#allocation8 + $0x750] sm:$0xff] }
 0x3a4   :  { %v2568_v52 = vpop.f32.mrf.mxu0  ;;  %3276 = vmatpush.bf16.msra.mxu0 %v4682_v5 }
 0x3a8   :  { %v2494_v35 = vpop.f32.mrf.mxu1  ;;  %3277 = vmatpush.bf16.msra.mxu0 %v4681_v10  ;;  %v3346_v10 = vld [vmem:[#allocation10 + $0x58] sm:$0xff] }
 0x3a9   :  { %v4703_v35 = vld [vmem:[#allocation8 + $0x7e0] sm:$0xff] }
 0x3ac   :  { %3278 = vmatpush.bf16.msra.mxu0 %v4680_v25 }
 0x3b0   :  { %v2579_v53 = vpop.f32.mrf.mxu1  ;;  %3279 = vmatpush.bf16.msra.mxu0 %v4679_v29  ;;  %v3345_v29 = vld [vmem:[#allocation10 + $0x50] sm:$0xff] }
 0x3b1   :  { %v2580_v56 = vadd.f32 %v2579_v53, %v2528_v43  ;;  %v4702_v43 = vld [vmem:[#allocation8 + $0x7d8] sm:$0xff] }
 0x3b3   :  { %v2610_v61 = vmax.f32 %v2580_v56, 0.0  ;;  %4319 = vmatmul.msk.bf16.vlgmr.msrb.gmra.mxu0 %vm124_vm1, %v4936_v6  ;;  %v4692_v56 = vld [vmem:[#allocation8 + $0x788] sm:$0xff] }
 0x3b4   :  { %3280 = vmatpush.bf16.msra.mxu0 %v4678_v33 }
 0x3b5   :  { %v2518_v1 = vpop.f32.mrf.mxu3  ;;  %v2614_v0 = vpack.c.bf16 %v2610_v61, %v2610_v61  ;;  %v4691_v61 = vld [vmem:[#allocation8 + $0x780] sm:$0xff] }
 0x3b6   :  { %v2505_v62 = vpop.f32.mrf.mxu2 }
 0x3b7   :  { %v2506_v63 = vadd.f32 %v2505_v62, %v2493_v26  ;;  %2894 = vmatmul.bf16.vlgmr.msra.gmra.mxu1 %v2614_v0  ;;  %v4688_v26 = vld [vmem:[#allocation8 + $0x768] sm:$0xff]  ;;  %v4699_v62 = vld [vmem:[#allocation8 + $0x7c0] sm:$0xff] }
 0x3b8   :  { %v2581_v3 = vpop.f32.mrf.mxu1  ;;  %3289 = vmatpush.bf16.msra.mxu1 %v4690_v7  ;;  %3281 = vmatpush.bf16.msra.mxu0 %v4677_v40  ;;  %v3348_v7 = vld [vmem:[#allocation10 + $0x68] sm:$0xff] }
 0x3b9   :  { %v2519_v2 = vadd.f32 %v2518_v1, %v2506_v63  ;;  %v3350_v3 = vld [vmem:[#allocation10 + $0x78] sm:$0xff] }
 0x3bb   :  { %v5090_v4 = vadd.f32 %v2519_v2, %v5069_v44 }
 0x3bc   :  { %3290 = vmatpush.bf16.msra.mxu1 %v4689_v9  ;;  %3282 = vmatpush.bf16.msra.mxu0 %v4676_v46 }
 0x3bd   :  { %v2520_v8 = vpop.f32.mrf.mxu3 }
 0x3be   :  { %v2507_v39 = vpop.f32.mrf.mxu2  ;;  %v3347_v8 = vld [vmem:[#allocation10 + $0x60] sm:$0xff] }
 0x3bf   :  { %v3349_v39 = vld [vmem:[#allocation10 + $0x70] sm:$0xff] }
 0x3c0   :  { %3291 = vmatpush.bf16.msra.mxu1 %v4688_v26  ;;  %3283 = vmatpush.bf16.msra.mxu0 %v4675_v54 }
 0x3c4   :  { %3292 = vmatpush.bf16.msra.mxu1 %v4687_v30  ;;  %3355 = vmatpush.msrb.mxu0 %v3350_v3  ;;  %v3344_v30 = vld [vmem:[#allocation10 + $0x48] sm:$0xff] }
 0x3c5   :  { %v2605_v15 = vpop.f32.mrf.mxu3 }
 0x3c6   :  { %v2592_v14 = vpop.f32.mrf.mxu2  ;;  %v2606_v16 = vadd.f32 %v2605_v15, %v2530_v12  ;;  %3356 = vmatpush.msrb.mxu0 %v3349_v39 }
 0x3c7   :  { %v2593_v44 = vadd.f32 %v2592_v14, %v2529_v11  ;;  %4320 = vmatmul.msk.bf16.vlgmr.msrb.gmra.mxu1 %vm124_vm1, %v4936_v6 }
 0x3c8   :  { %v2612_v19 = vmax.f32 %v2606_v16, 0.0  ;;  %3293 = vmatpush.bf16.msra.mxu1 %v4686_v34  ;;  %3357 = vmatpush.msrb.mxu0 %v3348_v7 }
 0x3c9   :  { %v2611_v18 = vmax.f32 %v2593_v44, 0.0 }
 0x3ca   :  { %v2616_v22 = vpack.c.bf16 %v2612_v19, %v2612_v19  ;;  %3358 = vmatpush.msrb.mxu0 %v3347_v8  ;;  %v2932_v19 = vperm.slane %v2928_v45, 2 }
 0x3cb   :  { %v2615_v20 = vpack.c.bf16 %v2611_v18, %v2611_v18 }
 0x3cc   :  { %2920 = vmatmul.bf16.vlgmr.msrb.gmra.mxu3 %v2616_v22  ;;  %3294 = vmatpush.bf16.msra.mxu1 %v4685_v41  ;;  %v3336_v41 = vld [vmem:[#allocation10 + $0x8] sm:$0xff] }
 0x3cd   :  { %2907 = vmatmul.bf16.vlgmr.msrb.gmra.mxu2 %v2615_v20  ;;  %v2607_v24 = vpop.f32.mrf.mxu3  ;;  %3315 = vmatpush.bf16.msrb.mxu3 %v4706_v21 }
 0x3ce   :  { %v2594_v23 = vpop.f32.mrf.mxu2  ;;  %3302 = vmatpush.bf16.msrb.mxu2 %v4698_v17  ;;  %3359 = vmatpush.msrb.mxu0 %v3346_v10  ;;  %v2933_v17 = vperm.slane %v2928_v45, 3 }
 0x3d0   :  { %3295 = vmatpush.bf16.msra.mxu1 %v4684_v47  ;;  %3360 = vmatpush.msrb.mxu0 %v3345_v29 }
 0x3d1   :  { %3316 = vmatpush.bf16.msrb.mxu3 %v4705_v28 }
 0x3d2   :  { %3303 = vmatpush.bf16.msrb.mxu2 %v4697_v27  ;;  %3361 = vmatpush.msrb.mxu0 %v3344_v30 }
 0x3d4   :  { %3296 = vmatpush.bf16.msra.mxu1 %v4683_v13  ;;  %v4718_v13 = vld [vmem:[%s5118_s6] ss:$0 sm:$0xff] }
 0x3d5   :  { %3317 = vmatpush.bf16.msrb.mxu3 %v4704_v32  ;;  %v3341_v32 = vld [vmem:[#allocation10 + $0x30] sm:$0xff] }
 0x3d6   :  { %3304 = vmatpush.bf16.msrb.mxu2 %v4696_v31  ;;  %v3342_v31 = vld [vmem:[#allocation10 + $0x38] sm:$0xff] }
 0x3d9   :  { %3318 = vmatpush.bf16.msrb.mxu3 %v4703_v35  ;;  %v3340_v35 = vld [vmem:[#allocation10 + $0x28] sm:$0xff] }
 0x3dc   :  { %4322 = vmatmul.msk.bf16.vlgmr.msra.gmra.mxu3 %vm124_vm1, %v4936_v6 }
 0x3dd   :  { %4321 = vmatmul.msk.bf16.vlgmr.msra.gmra.mxu2 %vm124_vm1, %v4936_v6  ;;  %v4695_v6 = vld [vmem:[#allocation8 + $0x7a0] sm:$0xff]  ;;  %3319 = vmatpush.bf16.msrb.mxu3 %v4702_v43 }
 0x3de   :  { %3305 = vmatpush.bf16.msrb.mxu2 %v4695_v6 }
 0x3e1   :  { %3320 = vmatpush.bf16.msrb.mxu3 %v4701_v50 }
 0x3e2   :  { %3306 = vmatpush.bf16.msrb.mxu2 %v4694_v42  ;;  %v3335_v42 = vld [vmem:[#allocation10] sm:$0xff] }
 0x3e5   :  { %3321 = vmatpush.bf16.msrb.mxu3 %v4700_v58 }
 0x3e6   :  { %3307 = vmatpush.bf16.msrb.mxu2 %v4693_v49  ;;  %v4717_v49 = vld [vmem:[%s5116_s4] ss:$0 sm:$0xff] }
 0x3e9   :  { %3322 = vmatpush.bf16.msrb.mxu3 %v4699_v62 }
 0x3ea   :  { %3308 = vmatpush.bf16.msrb.mxu2 %v4692_v56 }
 0x3ee   :  { %3309 = vmatpush.bf16.msrb.mxu2 %v4691_v61 }
 0x420   :  { %v2882_v55 = vpop.f32.mrf.mxu0 }
 0x428   :  { %v2884_v36 = vpop.f32.mrf.mxu0 }
 0x429   :  { %v3339_v36 = vld [vmem:[#allocation10 + $0x20] sm:$0xff] }
 0x430   :  { %v2969_v51 = vpop.f32.mrf.mxu0 }
 0x431   :  { %v2970_v53 = vadd.f32 %v2969_v51, %v2930_v48 }
 0x433   :  { %v3012_v57 = vmax.f32 %v2970_v53, 0.0 }
 0x434   :  { %v2895_v37 = vpop.f32.mrf.mxu1 }
 0x435   :  { %v2896_v38 = vadd.f32 %v2895_v37, %v2882_v55  ;;  %v3016_v59 = vpack.c.bf16 %v3012_v57, %v3012_v57  ;;  %v3338_v37 = vld [vmem:[#allocation10 + $0x18] sm:$0xff] }
 0x437   :  { %3284 = vmatmul.bf16.vlgmr.msra.gmra.mxu0 %v3016_v59 }
 0x438   :  { %v2971_v63 = vpop.f32.mrf.mxu0 }
 0x43c   :  { %v2897_v52 = vpop.f32.mrf.mxu1 }
 0x444   :  { %v2982_v1 = vpop.f32.mrf.mxu1 }
 0x445   :  { %v2983_v0 = vadd.f32 %v2982_v1, %v2931_v60 }
 0x447   :  { %v3013_v2 = vmax.f32 %v2983_v0, 0.0 }
 0x449   :  { %v3017_v5 = vpack.c.bf16 %v3013_v2, %v3013_v2 }
 0x44b   :  { %3297 = vmatmul.bf16.vlgmr.msra.gmra.mxu1 %v3017_v5 }
 0x44c   :  { %v2984_v9 = vpop.f32.mrf.mxu1 }
 0x44f   :  { %v2921_v14 = vpop.f32.mrf.mxu3 }
 0x450   :  { %v2908_v11 = vpop.f32.mrf.mxu2 }
 0x451   :  { %v2909_v12 = vadd.f32 %v2908_v11, %v2896_v38  ;;  %v3337_v38 = vld [vmem:[#allocation10 + $0x10] sm:$0xff] }
 0x453   :  { %v2922_v44 = vadd.f32 %v2921_v14, %v2909_v12 }
 0x455   :  { %v2925_v15 = vadd.f32 %v2922_v44, %v5090_v4  ;;  %v3343_v4 = vld [vmem:[#allocation10 + $0x40] sm:$0xff] }
 0x456   :  { %3362 = vmatpush.msrb.mxu0 %v3343_v4 }
 0x457   :  { %v2923_v18 = vpop.f32.mrf.mxu3 }
 0x458   :  { %v2910_v16 = vpop.f32.mrf.mxu2  ;;  %3363 = vmatpush.msrb.mxu0 %v3342_v31 }
 0x45a   :  { %3364 = vmatpush.msrb.mxu0 %v3341_v32 }
 0x45c   :  { %3365 = vmatpush.msrb.mxu0 %v3340_v35 }
 0x45e   :  { %3366 = vmatpush.msrb.mxu0 %v3339_v36 }
 0x45f   :  { %v3008_v22 = vpop.f32.mrf.mxu3 }
 0x460   :  { %v2995_v20 = vpop.f32.mrf.mxu2  ;;  %v3009_v23 = vadd.f32 %v3008_v22, %v2933_v17  ;;  %3367 = vmatpush.msrb.mxu0 %v3338_v37 }
 0x461   :  { %v2996_v21 = vadd.f32 %v2995_v20, %v2932_v19 }
 0x462   :  { %v3015_v25 = vmax.f32 %v3009_v23, 0.0  ;;  %3368 = vmatpush.msrb.mxu0 %v3337_v38 }
 0x463   :  { %v3014_v24 = vmax.f32 %v2996_v21, 0.0 }
 0x464   :  { %v3019_v27 = vpack.c.bf16 %v3015_v25, %v3015_v25  ;;  %3369 = vmatpush.msrb.mxu0 %v3336_v41 }
 0x465   :  { %v3018_v26 = vpack.c.bf16 %v3014_v24, %v3014_v24 }
 0x466   :  { %3323 = vmatmul.bf16.vlgmr.msrb.gmra.mxu3 %v3019_v27  ;;  %3370 = vmatpush.msrb.mxu0 %v3335_v42 }
 0x467   :  { %3310 = vmatmul.bf16.vlgmr.msrb.gmra.mxu2 %v3018_v26  ;;  %v3010_v55 = vpop.f32.mrf.mxu3 }
 0x468   :  { %v2997_v28 = vpop.f32.mrf.mxu2 }
 0x4b4   :  { %v3285_v33 = vpop.f32.mrf.mxu0 }
 0x4bc   :  { %v3287_v34 = vpop.f32.mrf.mxu0 }
 0x4c8   :  { %v3298_v6 = vpop.f32.mrf.mxu1 }
 0x4c9   :  { %v3299_v43 = vadd.f32 %v3298_v6, %v3285_v33 }
 0x4d0   :  { %v3300_v40 = vpop.f32.mrf.mxu1 }
 0x4e9   :  { %v3324_v47 = vpop.f32.mrf.mxu3 }
 0x4ea   :  { %v3311_v45 = vpop.f32.mrf.mxu2 }
 0x4eb   :  { %v3312_v46 = vadd.f32 %v3311_v45, %v3299_v43 }
 0x4ed   :  { %v3325_v48 = vadd.f32 %v3324_v47, %v3312_v46 }
 0x4ef   :  { %v3328_v50 = vadd.f32 %v3325_v48, %v2925_v15 }
 0x4f1   :  { %v3333_v51 = vadd.f32 %v4717_v49, %v3328_v50  ;;  %v3326_v54 = vpop.f32.mrf.mxu3 }
 0x4f2   :  { %v3313_v52 = vpop.f32.mrf.mxu2 }
 0x4f3   :  { %v3334_v53 = vmax.f32 %v3333_v51, 0.0 }
 0x4f5   :  { %3371 = vmatmul.f32.vlgmr.msrb.gmra.mxu0 %v3334_v53 }
 0x572   :  { %v3372_v56 = vpop.f32.mrf.mxu0 }
 0x573   :  { %v3373_v57 = vadd.f32 %v4718_v13, %v3372_v56 }
 0x575   :  { %3375 = vst [vmem:[#allocation11] sm:$0xff] %v3373_v57 }
 0x576   :  { %3386 = dma.vmem_to_hbm [thread:$0]  %s3382_s30, 128, %s3384_s10, [#allocation4]  }
 0x577   :  { %4869 = dma.done.wait [#allocation4], 128  }
 0x578   :  { %4870 = vsyncadd [#allocation4], 4294967168 }
 0x579   :  { %3391 = vsyncpa [#allocation3], 1 }
 0x57a   :  { %3392 = vsyncpa [#allocation6], 1 }
 0x57b   :  { %3393 = vsyncpa [#allocation9], 1 }
 0x57c   :  { %3394 = vsyncpa [#allocation4], 1 }

</bundles_post_ra>
